<compile_context>
chip_gen: v5e
topology: v5e:2x2
jax: 0.10.0
libtpu: 0.0.40
codegen_flags: <defaults>
</compile_context>

<pallas_src>
import functools

import jax
import jax.numpy as jnp
import numpy as np
from jax.experimental import pallas as pl
from jax.experimental.pallas import tpu as pltpu


# ----------------------------------------------------------------------------
# Fused forward kernel: one BT-sample batch tile per grid step.
# ----------------------------------------------------------------------------
def _fused_cnn_kernel(x_ref, w1b_ref, b1t_ref, s1_ref,
                      w2b_ref, b2t_ref, s2_ref,
                      fc1w_ref, fc1b_ref, fc2w_ref, fc2b_ref,
                      o_ref, xp1_ref, xp2_ref, *, bt):
    f32 = jnp.float32
    zrow = jnp.zeros((bt, 1, 64), f32)

    # ---------------- Conv1 (4->8, 3x3, s1, p1) + ReLU ----------------
    # xp1 rows 1..16 hold the image rows, rows 0/17 are the zero halo.
    # (w-padding is folded into the banded weights, so lanes need no halo.)
    xp1_ref[:, 0:1, :] = zrow
    xp1_ref[:, 17:18, :] = zrow
    xp1_ref[:, 1:17, :] = x_ref[...]                       # [bt, 16, 64] (h, w*4+c)

    acc1 = jnp.zeros((bt * 16, 128), f32)
    for kh in range(3):                                    # 3 banded matmuls (K=64)
        lhs = xp1_ref[:, kh:kh + 16, :].reshape(bt * 16, 64)
        acc1 = acc1 + jnp.dot(lhs, w1b_ref[kh], preferred_element_type=f32)
    h1 = jnp.maximum(acc1 + b1t_ref[...], 0.0)             # [bt*16, 128]

    # ---------------- MaxPool 2x2 (16x16 -> 8x8) ----------------
    r1 = jnp.dot(s1_ref[...], h1, preferred_element_type=f32)   # row-parity regroup
    h1 = jnp.maximum(r1[:bt * 8, :], r1[bt * 8:, :])       # max over y-pairs
    p1 = jnp.maximum(h1[:, 0:64], h1[:, 64:128])           # max over x-pairs -> [bt*8, 64]

    # ---------------- Conv2 (8->16, 3x3, s1, p1) + ReLU ----------------
    xp2_ref[:, 0:1, :] = zrow
    xp2_ref[:, 9:10, :] = zrow
    xp2_ref[:, 1:9, :] = p1.reshape(bt, 8, 64)             # (b, y', x'*8+c)

    acc2 = jnp.zeros((bt * 8, 128), f32)
    for kh in range(3):
        lhs = xp2_ref[:, kh:kh + 8, :].reshape(bt * 8, 64)
        acc2 = acc2 + jnp.dot(lhs, w2b_ref[kh], preferred_element_type=f32)
    h2 = jnp.maximum(acc2 + b2t_ref[...], 0.0)             # [bt*8, 128]

    # ---------------- MaxPool 2x2 (8x8 -> 4x4) ----------------
    r2 = jnp.dot(s2_ref[...], h2, preferred_element_type=f32)
    h2 = jnp.maximum(r2[:bt * 4, :], r2[bt * 4:, :])
    p2 = jnp.maximum(h2[:, 0:64], h2[:, 64:128])           # [bt*4, 64], rows = (h, b)

    # ---------------- Flatten + FC1 (256->32) + ReLU ----------------
    # PyTorch's (C,H,W) flatten order is folded into the per-h fc1 weights.
    f1 = jnp.zeros((bt, 32), f32)
    for hh in range(4):
        f1 = f1 + jnp.dot(p2[hh * bt:(hh + 1) * bt, :], fc1w_ref[hh],
                          preferred_element_type=f32)
    f1 = jnp.maximum(f1 + fc1b_ref[...], 0.0)              # [bt, 32]

    # ---------------- FC2 (32->2, lane-padded to 128) + Sigmoid ----------------
    logits = jnp.dot(f1, fc2w_ref[...], preferred_element_type=f32) + fc2b_ref[...]
    probs = pl.reciprocal(1.0 + jnp.exp(-logits), approx=True)   # EUP exp + recip
    o_ref[...] = probs.astype(o_ref.dtype)                 # full (bt,128) tile store


# ----------------------------------------------------------------------------
# One-time parameter preparation (runs outside the forward pass).
# ----------------------------------------------------------------------------
def init_params(key):
    ks = jax.random.split(key, 8)
    scale = 0.1
    return {
        "conv1_w": scale * jax.random.normal(ks[0], (8, 4, 3, 3), jnp.float32),
        "conv1_b": scale * jax.random.normal(ks[1], (8,), jnp.float32),
        "conv2_w": scale * jax.random.normal(ks[2], (16, 8, 3, 3), jnp.float32),
        "conv2_b": scale * jax.random.normal(ks[3], (16,), jnp.float32),
        "fc1_w": scale * jax.random.normal(ks[4], (32, 256), jnp.float32),  # PyTorch [out, in]
        "fc1_b": scale * jax.random.normal(ks[5], (32,), jnp.float32),
        "fc2_w": scale * jax.random.normal(ks[6], (2, 32), jnp.float32),
        "fc2_b": scale * jax.random.normal(ks[7], (2,), jnp.float32),
    }


def prepare_params(params):
    """Re-layout the PyTorch weights into banded / lane-dense form (done once).

    Conv bands: w_band[kh][wi*Cin + cin, e*64 + x'*Cout + cout] = w[cout, cin, kh, kw]
    with kw = wi - (2*x'+e) + 1 when 0 <= kw <= 2 (zero-padding & the even/odd
    column split used by the pool are folded in).
    """
    w1 = np.asarray(params["conv1_w"], np.float32)          # [8, 4, 3, 3]
    w2 = np.asarray(params["conv2_w"], np.float32)          # [16, 8, 3, 3]

    w1b = np.zeros((3, 16 * 4, 128), np.float32)
    for kh in range(3):
        for xo in range(16):
            col = (xo % 2) * 64 + (xo // 2) * 8
            for kw in range(3):
                wi = xo + kw - 1
                if 0 <= wi < 16:
                    w1b[kh, wi * 4:(wi + 1) * 4, col:col + 8] = w1[:, :, kh, kw].T
    b1t = np.tile(np.asarray(params["conv1_b"], np.float32), 16).reshape(1, 128)

    w2b = np.zeros((3, 8 * 8, 128), np.float32)
    for kh in range(3):
        for xo in range(8):
            col = (xo % 2) * 64 + (xo // 2) * 16
            for kw in range(3):
                wi = xo + kw - 1
                if 0 <= wi < 8:
                    w2b[kh, wi * 8:(wi + 1) * 8, col:col + 16] = w2[:, :, kh, kw].T
    b2t = np.tile(np.asarray(params["conv2_b"], np.float32), 8).reshape(1, 128)

    # fc1: PyTorch flatten index is c*16 + h*4 + w -> per-h weights [4, w*16+c, out].
    fc1 = np.asarray(params["fc1_w"], np.float32).reshape(32, 16, 4, 4)  # [out, c, h, w]
    fc1 = fc1.transpose(2, 3, 1, 0).reshape(4, 64, 32)                   # [h, w*16+c, out]
    fc1b = np.asarray(params["fc1_b"], np.float32).reshape(1, 32)

    # fc2: [out, in] -> [in, out], out-dim padded 2 -> 128 for a lane-dense store.
    fc2 = np.zeros((32, 128), np.float32)
    fc2[:, :2] = np.asarray(params["fc2_w"], np.float32).T
    fc2b = np.zeros((1, 128), np.float32)
    fc2b[0, :2] = np.asarray(params["fc2_b"], np.float32)

    return tuple(jnp.asarray(a) for a in (w1b, b1t, w2b, b2t, fc1, fc1b, fc2, fc2b))


def _pool_row_perm(bt, out_rows, *, h_major):
    """0/1 permutation regrouping conv-output rows (b, y) into two y-parity
    halves so the pool's row reduction is a max of two aligned row blocks.
    Within a half, rows are (b, y') (conv2 hand-off) or (y'', b) (FC1 hand-off)."""
    size = bt * out_rows * 2
    s = np.zeros((size, size), np.float32)
    for b in range(bt):
        for y in range(out_rows):
            for e in range(2):
                half = y * bt + b if h_major else b * out_rows + y
                dst = e * bt * out_rows + half
                src = b * (2 * out_rows) + 2 * y + e
                s[dst, src] = 1.0
    return s


# ----------------------------------------------------------------------------
# Forward pass: one fused pallas_call, grid over batch tiles.
# ----------------------------------------------------------------------------
def simple_cnn_forward(prepared, x_nchw, *, block_batch=8):
    (w1b, b1t, w2b, b2t, fc1w, fc1b, fc2w, fc2b) = prepared
    assert block_batch % 8 == 0
    n = x_nchw.shape[0]
    nb = (n + block_batch - 1) // block_batch
    n_pad = nb * block_batch

    # NHWC with (w, c) merged into 64 lanes; pad batch up to a whole tile.
    x = jnp.transpose(x_nchw.astype(jnp.float32), (0, 2, 3, 1)).reshape(n, 16, 64)
    if n_pad != n:
        x = jnp.pad(x, ((0, n_pad - n), (0, 0), (0, 0)))

    s1 = jnp.asarray(_pool_row_perm(block_batch, 8, h_major=False))
    s2 = jnp.asarray(_pool_row_perm(block_batch, 4, h_major=True))

    kernel = functools.partial(_fused_cnn_kernel, bt=block_batch)
    out = pl.pallas_call(
        kernel,
        out_shape=jax.ShapeDtypeStruct((n_pad, 128), jnp.float32),
        grid=(nb,),
        in_specs=[
            pl.BlockSpec((block_batch, 16, 64), lambda b: (b, 0, 0)),            # x tile
            pl.BlockSpec((3, 64, 128), lambda b: (0, 0, 0)),                     # conv1 bands
            pl.BlockSpec((1, 128), lambda b: (0, 0)),                            # conv1 bias (tiled)
            pl.BlockSpec((block_batch * 16, block_batch * 16), lambda b: (0, 0)),  # pool1 row perm
            pl.BlockSpec((3, 64, 128), lambda b: (0, 0, 0)),                     # conv2 bands
            pl.BlockSpec((1, 128), lambda b: (0, 0)),                            # conv2 bias (tiled)
            pl.BlockSpec((block_batch * 8, block_batch * 8), lambda b: (0, 0)),  # pool2 row perm
            pl.BlockSpec((4, 64, 32), lambda b: (0, 0, 0)),                      # fc1 (per-h)
            pl.BlockSpec((1, 32), lambda b: (0, 0)),                             # fc1 bias
            pl.BlockSpec((32, 128), lambda b: (0, 0)),                           # fc2 (lane-padded)
            pl.BlockSpec((1, 128), lambda b: (0, 0)),                            # fc2 bias
        ],
        out_specs=pl.BlockSpec((block_batch, 128), lambda b: (b, 0)),
        scratch_shapes=[
            pltpu.VMEM((block_batch, 18, 64), jnp.float32),   # conv1 row-padded input
            pltpu.VMEM((block_batch, 10, 64), jnp.float32),   # conv2 row-padded input
        ],
        compiler_params=pltpu.CompilerParams(
            dimension_semantics=("parallel",)),               # batch tiles across TCs (v7x)
    )(x, w1b, b1t, s1, w2b, b2t, s2, fc1w, fc1b, fc2w, fc2b)

    return out[:n, :2]                                        # drop batch pad + lane pad


# ----------------------------------------------------------------------------
# Pure-JAX reference (PyTorch semantics) for the correctness check.
# ----------------------------------------------------------------------------
def reference_forward(params, x):
    y = jax.lax.conv_general_dilated(
        x, params["conv1_w"], (1, 1), ((1, 1), (1, 1)),
        dimension_numbers=("NCHW", "OIHW", "NCHW"))
    y = jnp.maximum(y + params["conv1_b"][None, :, None, None], 0.0)
    y = jax.lax.reduce_window(y, -jnp.inf, jax.lax.max,
                              (1, 1, 2, 2), (1, 1, 2, 2), "VALID")
    y = jax.lax.conv_general_dilated(
        y, params["conv2_w"], (1, 1), ((1, 1), (1, 1)),
        dimension_numbers=("NCHW", "OIHW", "NCHW"))
    y = jnp.maximum(y + params["conv2_b"][None, :, None, None], 0.0)
    y = jax.lax.reduce_window(y, -jnp.inf, jax.lax.max,
                              (1, 1, 2, 2), (1, 1, 2, 2), "VALID")
    y = y.reshape(y.shape[0], -1)                             # PyTorch (C,H,W) flatten
    y = jnp.maximum(y @ params["fc1_w"].T + params["fc1_b"], 0.0)
    y = y @ params["fc2_w"].T + params["fc2_b"]
    return 1.0 / (1.0 + jnp.exp(-y))


if __name__ == "__main__":
    key = jax.random.PRNGKey(0)
    k_x, k_p = jax.random.split(key)
    x = jax.random.normal(k_x, (2, 4, 16, 16), jnp.float32)   # NCHW, like PyTorch
    params = init_params(k_p)
    prepared = prepare_params(params)                         # one-time weight re-layout

    fwd = jax.jit(simple_cnn_forward)
    out = jax.block_until_ready(fwd(prepared, x))

    assert out.shape == (2, 2), out.shape
    assert bool(jnp.all((out > -1e-5) & (out < 1.0 + 1e-5)))  # sigmoid range
    ref = reference_forward(params, x)
    # 5e-3 abs tolerance: the only approximation vs. the f32 reference is the
    # EUP approximate reciprocal in the final sigmoid.
    assert bool(jnp.max(jnp.abs(out - ref)) < 5e-3), float(jnp.max(jnp.abs(out - ref)))
    print("KERNEL_OK")
</pallas_src>

<mosaic_0001>
module attributes {stable_mosaic.version = 11 : i64} {
  func.func @_fused_cnn_kernel(%arg0: i32, %arg1: memref<8x16x64xf32, #tpu.memory_space<vmem>>, %arg2: memref<3x64x128xf32, #tpu.memory_space<vmem>>, %arg3: memref<1x128xf32, #tpu.memory_space<vmem>>, %arg4: memref<128x128xf32, #tpu.memory_space<vmem>>, %arg5: memref<3x64x128xf32, #tpu.memory_space<vmem>>, %arg6: memref<1x128xf32, #tpu.memory_space<vmem>>, %arg7: memref<64x64xf32, #tpu.memory_space<vmem>>, %arg8: memref<4x64x32xf32, #tpu.memory_space<vmem>>, %arg9: memref<1x32xf32, #tpu.memory_space<vmem>>, %arg10: memref<32x128xf32, #tpu.memory_space<vmem>>, %arg11: memref<1x128xf32, #tpu.memory_space<vmem>>, %arg12: memref<8x128xf32, #tpu.memory_space<vmem>>, %arg13: memref<8x18x64xf32, #tpu.memory_space<vmem>>, %arg14: memref<8x10x64xf32, #tpu.memory_space<vmem>>) attributes {dimension_semantics = [#tpu.dimension_semantics<parallel>], iteration_bounds = array<i64: 1>, scalar_prefetch = 0 : i64, scratch_operands = 2 : i64, tpu.core_type = #tpu.core_type<tc>, window_params = [{transform_indices = @transform_0, window_bounds = array<i64: 8, 16, 64>}, {pipeline_mode = #tpu.pipeline_mode<synchronous>, transform_indices = @transform_1, window_bounds = array<i64: 3, 64, 128>}, {pipeline_mode = #tpu.pipeline_mode<synchronous>, transform_indices = @transform_2, window_bounds = array<i64: 1, 128>}, {pipeline_mode = #tpu.pipeline_mode<synchronous>, transform_indices = @transform_3, window_bounds = array<i64: 128, 128>}, {pipeline_mode = #tpu.pipeline_mode<synchronous>, transform_indices = @transform_4, window_bounds = array<i64: 3, 64, 128>}, {pipeline_mode = #tpu.pipeline_mode<synchronous>, transform_indices = @transform_5, window_bounds = array<i64: 1, 128>}, {pipeline_mode = #tpu.pipeline_mode<synchronous>, transform_indices = @transform_6, window_bounds = array<i64: 64, 64>}, {pipeline_mode = #tpu.pipeline_mode<synchronous>, transform_indices = @transform_7, window_bounds = array<i64: 4, 64, 32>}, {pipeline_mode = #tpu.pipeline_mode<synchronous>, transform_indices = @transform_8, window_bounds = array<i64: 1, 32>}, {pipeline_mode = #tpu.pipeline_mode<synchronous>, transform_indices = @transform_9, window_bounds = array<i64: 32, 128>}, {pipeline_mode = #tpu.pipeline_mode<synchronous>, transform_indices = @transform_10, window_bounds = array<i64: 1, 128>}, {transform_indices = @transform_11, window_bounds = array<i64: 8, 128>}]} {
    %cst = arith.constant 0.000000e+00 : f32
    %0 = vector.broadcast %cst : f32 to vector<8x1x64xf32>
    %c0 = arith.constant 0 : index
    %c0_0 = arith.constant 0 : index
    %c0_1 = arith.constant 0 : index
    %1 = vector.load %arg13[%c0, %c0_0, %c0_1] : memref<8x18x64xf32, #tpu.memory_space<vmem>>, vector<8x1x64xf32>
    tpu.vector_store %arg13[%c0, %c0_0, %c0_1], %0 {strides = array<i32>} : memref<8x18x64xf32, #tpu.memory_space<vmem>>, vector<8x1x64xf32>,
    %c0_2 = arith.constant 0 : index
    %c17 = arith.constant 17 : index
    %c0_3 = arith.constant 0 : index
    %2 = vector.load %arg13[%c0_2, %c17, %c0_3] : memref<8x18x64xf32, #tpu.memory_space<vmem>>, vector<8x1x64xf32>
    tpu.vector_store %arg13[%c0_2, %c17, %c0_3], %0 {strides = array<i32>} : memref<8x18x64xf32, #tpu.memory_space<vmem>>, vector<8x1x64xf32>,
    %c0_4 = arith.constant 0 : index
    %c0_5 = arith.constant 0 : index
    %c0_6 = arith.constant 0 : index
    %3 = vector.load %arg1[%c0_4, %c0_5, %c0_6] : memref<8x16x64xf32, #tpu.memory_space<vmem>>, vector<8x16x64xf32>
    %c0_7 = arith.constant 0 : index
    %c1 = arith.constant 1 : index
    %c0_8 = arith.constant 0 : index
    %4 = vector.load %arg13[%c0_7, %c1, %c0_8] : memref<8x18x64xf32, #tpu.memory_space<vmem>>, vector<8x16x64xf32>
    tpu.vector_store %arg13[%c0_7, %c1, %c0_8], %3 {strides = array<i32>} : memref<8x18x64xf32, #tpu.memory_space<vmem>>, vector<8x16x64xf32>,
    %cst_9 = arith.constant 0.000000e+00 : f32
    %5 = vector.broadcast %cst_9 : f32 to vector<128x128xf32>
    %c0_10 = arith.constant 0 : index
    %c0_11 = arith.constant 0 : index
    %c0_12 = arith.constant 0 : index
    %6 = vector.load %arg13[%c0_10, %c0_11, %c0_12] : memref<8x18x64xf32, #tpu.memory_space<vmem>>, vector<8x16x64xf32>
    %7 = vector.shape_cast %6 : vector<8x16x64xf32> to vector<128x64xf32>
    %c0_13 = arith.constant 0 : index
    %c0_14 = arith.constant 0 : index
    %c0_15 = arith.constant 0 : index
    %8 = vector.load %arg2[%c0_13, %c0_14, %c0_15] : memref<3x64x128xf32, #tpu.memory_space<vmem>>, vector<1x64x128xf32>
    %9 = vector.shape_cast %8 : vector<1x64x128xf32> to vector<64x128xf32>
    %cst_16 = arith.constant dense<0.000000e+00> : vector<128x128xf32>
    %10 = tpu.matmul %7, %9, %cst_16 {dimension_numbers = #tpu.dot_dimension_numbers<[1], [0], [0], [1], [0, 0, 1, 1], [], []>} : vector<128x64xf32>, vector<64x128xf32>, vector<128x128xf32> -> vector<128x128xf32>
    %11 = arith.addf %5, %10 : vector<128x128xf32>
    %c0_17 = arith.constant 0 : index
    %c1_18 = arith.constant 1 : index
    %c0_19 = arith.constant 0 : index
    %12 = vector.load %arg13[%c0_17, %c1_18, %c0_19] : memref<8x18x64xf32, #tpu.memory_space<vmem>>, vector<8x16x64xf32>
    %13 = vector.shape_cast %12 : vector<8x16x64xf32> to vector<128x64xf32>
    %c1_20 = arith.constant 1 : index
    %c0_21 = arith.constant 0 : index
    %c0_22 = arith.constant 0 : index
    %14 = vector.load %arg2[%c1_20, %c0_21, %c0_22] : memref<3x64x128xf32, #tpu.memory_space<vmem>>, vector<1x64x128xf32>
    %15 = vector.shape_cast %14 : vector<1x64x128xf32> to vector<64x128xf32>
    %cst_23 = arith.constant dense<0.000000e+00> : vector<128x128xf32>
    %16 = tpu.matmul %13, %15, %cst_23 {dimension_numbers = #tpu.dot_dimension_numbers<[1], [0], [0], [1], [0, 0, 1, 1], [], []>} : vector<128x64xf32>, vector<64x128xf32>, vector<128x128xf32> -> vector<128x128xf32>
    %17 = arith.addf %11, %16 : vector<128x128xf32>
    %c0_24 = arith.constant 0 : index
    %c2 = arith.constant 2 : index
    %c0_25 = arith.constant 0 : index
    %18 = vector.load %arg13[%c0_24, %c2, %c0_25] : memref<8x18x64xf32, #tpu.memory_space<vmem>>, vector<8x16x64xf32>
    %19 = vector.shape_cast %18 : vector<8x16x64xf32> to vector<128x64xf32>
    %c2_26 = arith.constant 2 : index
    %c0_27 = arith.constant 0 : index
    %c0_28 = arith.constant 0 : index
    %20 = vector.load %arg2[%c2_26, %c0_27, %c0_28] : memref<3x64x128xf32, #tpu.memory_space<vmem>>, vector<1x64x128xf32>
    %21 = vector.shape_cast %20 : vector<1x64x128xf32> to vector<64x128xf32>
    %cst_29 = arith.constant dense<0.000000e+00> : vector<128x128xf32>
    %22 = tpu.matmul %19, %21, %cst_29 {dimension_numbers = #tpu.dot_dimension_numbers<[1], [0], [0], [1], [0, 0, 1, 1], [], []>} : vector<128x64xf32>, vector<64x128xf32>, vector<128x128xf32> -> vector<128x128xf32>
    %23 = arith.addf %17, %22 : vector<128x128xf32>
    %c0_30 = arith.constant 0 : index
    %c0_31 = arith.constant 0 : index
    %24 = vector.load %arg3[%c0_30, %c0_31] : memref<1x128xf32, #tpu.memory_space<vmem>>, vector<1x128xf32>
    %25 = vector.broadcast %24 : vector<1x128xf32> to vector<128x128xf32>
    %26 = arith.addf %23, %25 : vector<128x128xf32>
    %cst_32 = arith.constant 0.000000e+00 : f32
    %27 = vector.broadcast %cst_32 : f32 to vector<128x128xf32>
    %28 = arith.maximumf %26, %27 : vector<128x128xf32>
    %c0_33 = arith.constant 0 : index
    %c0_34 = arith.constant 0 : index
    %29 = vector.load %arg4[%c0_33, %c0_34] : memref<128x128xf32, #tpu.memory_space<vmem>>, vector<128x128xf32>
    %cst_35 = arith.constant dense<0.000000e+00> : vector<128x128xf32>
    %30 = tpu.matmul %29, %28, %cst_35 {dimension_numbers = #tpu.dot_dimension_numbers<[1], [0], [0], [1], [0, 0, 1, 1], [], []>} : vector<128x128xf32>, vector<128x128xf32>, vector<128x128xf32> -> vector<128x128xf32>
    %31 = vector.extract_strided_slice %30 {offsets = [0, 0], sizes = [64, 128], strides = [1, 1]} : vector<128x128xf32> to vector<64x128xf32>
    %32 = vector.extract_strided_slice %30 {offsets = [64, 0], sizes = [64, 128], strides = [1, 1]} : vector<128x128xf32> to vector<64x128xf32>
    %33 = arith.maximumf %31, %32 : vector<64x128xf32>
    %34 = vector.extract_strided_slice %33 {offsets = [0, 0], sizes = [64, 64], strides = [1, 1]} : vector<64x128xf32> to vector<64x64xf32>
    %35 = vector.extract_strided_slice %33 {offsets = [0, 64], sizes = [64, 64], strides = [1, 1]} : vector<64x128xf32> to vector<64x64xf32>
    %36 = arith.maximumf %34, %35 : vector<64x64xf32>
    %c0_36 = arith.constant 0 : index
    %c0_37 = arith.constant 0 : index
    %c0_38 = arith.constant 0 : index
    %37 = vector.load %arg14[%c0_36, %c0_37, %c0_38] : memref<8x10x64xf32, #tpu.memory_space<vmem>>, vector<8x1x64xf32>
    tpu.vector_store %arg14[%c0_36, %c0_37, %c0_38], %0 {strides = array<i32>} : memref<8x10x64xf32, #tpu.memory_space<vmem>>, vector<8x1x64xf32>,
    %c0_39 = arith.constant 0 : index
    %c9 = arith.constant 9 : index
    %c0_40 = arith.constant 0 : index
    %38 = vector.load %arg14[%c0_39, %c9, %c0_40] : memref<8x10x64xf32, #tpu.memory_space<vmem>>, vector<8x1x64xf32>
    tpu.vector_store %arg14[%c0_39, %c9, %c0_40], %0 {strides = array<i32>} : memref<8x10x64xf32, #tpu.memory_space<vmem>>, vector<8x1x64xf32>,
    %39 = vector.shape_cast %36 : vector<64x64xf32> to vector<8x8x64xf32>
    %c0_41 = arith.constant 0 : index
    %c1_42 = arith.constant 1 : index
    %c0_43 = arith.constant 0 : index
    %40 = vector.load %arg14[%c0_41, %c1_42, %c0_43] : memref<8x10x64xf32, #tpu.memory_space<vmem>>, vector<8x8x64xf32>
    tpu.vector_store %arg14[%c0_41, %c1_42, %c0_43], %39 {strides = array<i32>} : memref<8x10x64xf32, #tpu.memory_space<vmem>>, vector<8x8x64xf32>,
    %cst_44 = arith.constant 0.000000e+00 : f32
    %41 = vector.broadcast %cst_44 : f32 to vector<64x128xf32>
    %c0_45 = arith.constant 0 : index
    %c0_46 = arith.constant 0 : index
    %c0_47 = arith.constant 0 : index
    %42 = vector.load %arg14[%c0_45, %c0_46, %c0_47] : memref<8x10x64xf32, #tpu.memory_space<vmem>>, vector<8x8x64xf32>
    %43 = vector.shape_cast %42 : vector<8x8x64xf32> to vector<64x64xf32>
    %c0_48 = arith.constant 0 : index
    %c0_49 = arith.constant 0 : index
    %c0_50 = arith.constant 0 : index
    %44 = vector.load %arg5[%c0_48, %c0_49, %c0_50] : memref<3x64x128xf32, #tpu.memory_space<vmem>>, vector<1x64x128xf32>
    %45 = vector.shape_cast %44 : vector<1x64x128xf32> to vector<64x128xf32>
    %cst_51 = arith.constant dense<0.000000e+00> : vector<64x128xf32>
    %46 = tpu.matmul %43, %45, %cst_51 {dimension_numbers = #tpu.dot_dimension_numbers<[1], [0], [0], [1], [0, 0, 1, 1], [], []>} : vector<64x64xf32>, vector<64x128xf32>, vector<64x128xf32> -> vector<64x128xf32>
    %47 = arith.addf %41, %46 : vector<64x128xf32>
    %c0_52 = arith.constant 0 : index
    %c1_53 = arith.constant 1 : index
    %c0_54 = arith.constant 0 : index
    %48 = vector.load %arg14[%c0_52, %c1_53, %c0_54] : memref<8x10x64xf32, #tpu.memory_space<vmem>>, vector<8x8x64xf32>
    %49 = vector.shape_cast %48 : vector<8x8x64xf32> to vector<64x64xf32>
    %c1_55 = arith.constant 1 : index
    %c0_56 = arith.constant 0 : index
    %c0_57 = arith.constant 0 : index
    %50 = vector.load %arg5[%c1_55, %c0_56, %c0_57] : memref<3x64x128xf32, #tpu.memory_space<vmem>>, vector<1x64x128xf32>
    %51 = vector.shape_cast %50 : vector<1x64x128xf32> to vector<64x128xf32>
    %cst_58 = arith.constant dense<0.000000e+00> : vector<64x128xf32>
    %52 = tpu.matmul %49, %51, %cst_58 {dimension_numbers = #tpu.dot_dimension_numbers<[1], [0], [0], [1], [0, 0, 1, 1], [], []>} : vector<64x64xf32>, vector<64x128xf32>, vector<64x128xf32> -> vector<64x128xf32>
    %53 = arith.addf %47, %52 : vector<64x128xf32>
    %c0_59 = arith.constant 0 : index
    %c2_60 = arith.constant 2 : index
    %c0_61 = arith.constant 0 : index
    %54 = vector.load %arg14[%c0_59, %c2_60, %c0_61] : memref<8x10x64xf32, #tpu.memory_space<vmem>>, vector<8x8x64xf32>
    %55 = vector.shape_cast %54 : vector<8x8x64xf32> to vector<64x64xf32>
    %c2_62 = arith.constant 2 : index
    %c0_63 = arith.constant 0 : index
    %c0_64 = arith.constant 0 : index
    %56 = vector.load %arg5[%c2_62, %c0_63, %c0_64] : memref<3x64x128xf32, #tpu.memory_space<vmem>>, vector<1x64x128xf32>
    %57 = vector.shape_cast %56 : vector<1x64x128xf32> to vector<64x128xf32>
    %cst_65 = arith.constant dense<0.000000e+00> : vector<64x128xf32>
    %58 = tpu.matmul %55, %57, %cst_65 {dimension_numbers = #tpu.dot_dimension_numbers<[1], [0], [0], [1], [0, 0, 1, 1], [], []>} : vector<64x64xf32>, vector<64x128xf32>, vector<64x128xf32> -> vector<64x128xf32>
    %59 = arith.addf %53, %58 : vector<64x128xf32>
    %c0_66 = arith.constant 0 : index
    %c0_67 = arith.constant 0 : index
    %60 = vector.load %arg6[%c0_66, %c0_67] : memref<1x128xf32, #tpu.memory_space<vmem>>, vector<1x128xf32>
    %61 = vector.broadcast %60 : vector<1x128xf32> to vector<64x128xf32>
    %62 = arith.addf %59, %61 : vector<64x128xf32>
    %cst_68 = arith.constant 0.000000e+00 : f32
    %63 = vector.broadcast %cst_68 : f32 to vector<64x128xf32>
    %64 = arith.maximumf %62, %63 : vector<64x128xf32>
    %c0_69 = arith.constant 0 : index
    %c0_70 = arith.constant 0 : index
    %65 = vector.load %arg7[%c0_69, %c0_70] : memref<64x64xf32, #tpu.memory_space<vmem>>, vector<64x64xf32>
    %cst_71 = arith.constant dense<0.000000e+00> : vector<64x128xf32>
    %66 = tpu.matmul %65, %64, %cst_71 {dimension_numbers = #tpu.dot_dimension_numbers<[1], [0], [0], [1], [0, 0, 1, 1], [], []>} : vector<64x64xf32>, vector<64x128xf32>, vector<64x128xf32> -> vector<64x128xf32>
    %67 = vector.extract_strided_slice %66 {offsets = [0, 0], sizes = [32, 128], strides = [1, 1]} : vector<64x128xf32> to vector<32x128xf32>
    %68 = vector.extract_strided_slice %66 {offsets = [32, 0], sizes = [32, 128], strides = [1, 1]} : vector<64x128xf32> to vector<32x128xf32>
    %69 = arith.maximumf %67, %68 : vector<32x128xf32>
    %70 = vector.extract_strided_slice %69 {offsets = [0, 0], sizes = [32, 64], strides = [1, 1]} : vector<32x128xf32> to vector<32x64xf32>
    %71 = vector.extract_strided_slice %69 {offsets = [0, 64], sizes = [32, 64], strides = [1, 1]} : vector<32x128xf32> to vector<32x64xf32>
    %72 = arith.maximumf %70, %71 : vector<32x64xf32>
    %cst_72 = arith.constant 0.000000e+00 : f32
    %73 = vector.broadcast %cst_72 : f32 to vector<8x32xf32>
    %74 = vector.extract_strided_slice %72 {offsets = [0, 0], sizes = [8, 64], strides = [1, 1]} : vector<32x64xf32> to vector<8x64xf32>
    %c0_73 = arith.constant 0 : index
    %c0_74 = arith.constant 0 : index
    %c0_75 = arith.constant 0 : index
    %75 = vector.load %arg8[%c0_73, %c0_74, %c0_75] : memref<4x64x32xf32, #tpu.memory_space<vmem>>, vector<1x64x32xf32>
    %76 = vector.shape_cast %75 : vector<1x64x32xf32> to vector<64x32xf32>
    %cst_76 = arith.constant dense<0.000000e+00> : vector<8x32xf32>
    %77 = tpu.matmul %74, %76, %cst_76 {dimension_numbers = #tpu.dot_dimension_numbers<[1], [0], [0], [1], [0, 0, 1, 1], [], []>} : vector<8x64xf32>, vector<64x32xf32>, vector<8x32xf32> -> vector<8x32xf32>
    %78 = arith.addf %73, %77 : vector<8x32xf32>
    %79 = vector.extract_strided_slice %72 {offsets = [8, 0], sizes = [8, 64], strides = [1, 1]} : vector<32x64xf32> to vector<8x64xf32>
    %c1_77 = arith.constant 1 : index
    %c0_78 = arith.constant 0 : index
    %c0_79 = arith.constant 0 : index
    %80 = vector.load %arg8[%c1_77, %c0_78, %c0_79] : memref<4x64x32xf32, #tpu.memory_space<vmem>>, vector<1x64x32xf32>
    %81 = vector.shape_cast %80 : vector<1x64x32xf32> to vector<64x32xf32>
    %cst_80 = arith.constant dense<0.000000e+00> : vector<8x32xf32>
    %82 = tpu.matmul %79, %81, %cst_80 {dimension_numbers = #tpu.dot_dimension_numbers<[1], [0], [0], [1], [0, 0, 1, 1], [], []>} : vector<8x64xf32>, vector<64x32xf32>, vector<8x32xf32> -> vector<8x32xf32>
    %83 = arith.addf %78, %82 : vector<8x32xf32>
    %84 = vector.extract_strided_slice %72 {offsets = [16, 0], sizes = [8, 64], strides = [1, 1]} : vector<32x64xf32> to vector<8x64xf32>
    %c2_81 = arith.constant 2 : index
    %c0_82 = arith.constant 0 : index
    %c0_83 = arith.constant 0 : index
    %85 = vector.load %arg8[%c2_81, %c0_82, %c0_83] : memref<4x64x32xf32, #tpu.memory_space<vmem>>, vector<1x64x32xf32>
    %86 = vector.shape_cast %85 : vector<1x64x32xf32> to vector<64x32xf32>
    %cst_84 = arith.constant dense<0.000000e+00> : vector<8x32xf32>
    %87 = tpu.matmul %84, %86, %cst_84 {dimension_numbers = #tpu.dot_dimension_numbers<[1], [0], [0], [1], [0, 0, 1, 1], [], []>} : vector<8x64xf32>, vector<64x32xf32>, vector<8x32xf32> -> vector<8x32xf32>
    %88 = arith.addf %83, %87 : vector<8x32xf32>
    %89 = vector.extract_strided_slice %72 {offsets = [24, 0], sizes = [8, 64], strides = [1, 1]} : vector<32x64xf32> to vector<8x64xf32>
    %c3 = arith.constant 3 : index
    %c0_85 = arith.constant 0 : index
    %c0_86 = arith.constant 0 : index
    %90 = vector.load %arg8[%c3, %c0_85, %c0_86] : memref<4x64x32xf32, #tpu.memory_space<vmem>>, vector<1x64x32xf32>
    %91 = vector.shape_cast %90 : vector<1x64x32xf32> to vector<64x32xf32>
    %cst_87 = arith.constant dense<0.000000e+00> : vector<8x32xf32>
    %92 = tpu.matmul %89, %91, %cst_87 {dimension_numbers = #tpu.dot_dimension_numbers<[1], [0], [0], [1], [0, 0, 1, 1], [], []>} : vector<8x64xf32>, vector<64x32xf32>, vector<8x32xf32> -> vector<8x32xf32>
    %93 = arith.addf %88, %92 : vector<8x32xf32>
    %c0_88 = arith.constant 0 : index
    %c0_89 = arith.constant 0 : index
    %94 = vector.load %arg9[%c0_88, %c0_89] : memref<1x32xf32, #tpu.memory_space<vmem>>, vector<1x32xf32>
    %95 = vector.broadcast %94 : vector<1x32xf32> to vector<8x32xf32>
    %96 = arith.addf %93, %95 : vector<8x32xf32>
    %cst_90 = arith.constant 0.000000e+00 : f32
    %97 = vector.broadcast %cst_90 : f32 to vector<8x32xf32>
    %98 = arith.maximumf %96, %97 : vector<8x32xf32>
    %c0_91 = arith.constant 0 : index
    %c0_92 = arith.constant 0 : index
    %99 = vector.load %arg10[%c0_91, %c0_92] : memref<32x128xf32, #tpu.memory_space<vmem>>, vector<32x128xf32>
    %cst_93 = arith.constant dense<0.000000e+00> : vector<8x128xf32>
    %100 = tpu.matmul %98, %99, %cst_93 {dimension_numbers = #tpu.dot_dimension_numbers<[1], [0], [0], [1], [0, 0, 1, 1], [], []>} : vector<8x32xf32>, vector<32x128xf32>, vector<8x128xf32> -> vector<8x128xf32>
    %c0_94 = arith.constant 0 : index
    %c0_95 = arith.constant 0 : index
    %101 = vector.load %arg11[%c0_94, %c0_95] : memref<1x128xf32, #tpu.memory_space<vmem>>, vector<1x128xf32>
    %102 = vector.broadcast %101 : vector<1x128xf32> to vector<8x128xf32>
    %103 = arith.addf %100, %102 : vector<8x128xf32>
    %cst_96 = arith.constant 0.000000e+00 : f32
    %104 = vector.broadcast %cst_96 : f32 to vector<8x128xf32>
    %105 = arith.subf %104, %103 : vector<8x128xf32>
    %106 = math.exp %105 : vector<8x128xf32>
    %cst_97 = arith.constant 1.000000e+00 : f32
    %107 = vector.broadcast %cst_97 : f32 to vector<8x128xf32>
    %108 = arith.addf %107, %106 : vector<8x128xf32>
    %109 = tpu.reciprocal %108 {approx = true} : vector<8x128xf32> -> vector<8x128xf32>
    %c0_98 = arith.constant 0 : index
    %c0_99 = arith.constant 0 : index
    %110 = vector.load %arg12[%c0_98, %c0_99] : memref<8x128xf32, #tpu.memory_space<vmem>>, vector<8x128xf32>
    tpu.vector_store %arg12[%c0_98, %c0_99], %109 {strides = array<i32>} : memref<8x128xf32, #tpu.memory_space<vmem>>, vector<8x128xf32>,
    return
  }
  func.func @transform_0(%arg0: i32) -> (i32, i32, i32) {
    %c0_i32 = arith.constant 0 : i32
    %c0_i32_0 = arith.constant 0 : i32
    %c0_i32_1 = arith.constant 0 : i32
    return %arg0, %c0_i32, %c0_i32_0 : i32, i32, i32
  }
  func.func @transform_1(%arg0: i32) -> (i32, i32, i32) {
    %c0_i32 = arith.constant 0 : i32
    %c0_i32_0 = arith.constant 0 : i32
    %c0_i32_1 = arith.constant 0 : i32
    %c0_i32_2 = arith.constant 0 : i32
    return %c0_i32, %c0_i32_0, %c0_i32_1 : i32, i32, i32
  }
  func.func @transform_2(%arg0: i32) -> (i32, i32) {
    %c0_i32 = arith.constant 0 : i32
    %c0_i32_0 = arith.constant 0 : i32
    %c0_i32_1 = arith.constant 0 : i32
    return %c0_i32, %c0_i32_0 : i32, i32
  }
  func.func @transform_3(%arg0: i32) -> (i32, i32) {
    %c0_i32 = arith.constant 0 : i32
    %c0_i32_0 = arith.constant 0 : i32
    %c0_i32_1 = arith.constant 0 : i32
    return %c0_i32, %c0_i32_0 : i32, i32
  }
  func.func @transform_4(%arg0: i32) -> (i32, i32, i32) {
    %c0_i32 = arith.constant 0 : i32
    %c0_i32_0 = arith.constant 0 : i32
    %c0_i32_1 = arith.constant 0 : i32
    %c0_i32_2 = arith.constant 0 : i32
    return %c0_i32, %c0_i32_0, %c0_i32_1 : i32, i32, i32
  }
  func.func @transform_5(%arg0: i32) -> (i32, i32) {
    %c0_i32 = arith.constant 0 : i32
    %c0_i32_0 = arith.constant 0 : i32
    %c0_i32_1 = arith.constant 0 : i32
    return %c0_i32, %c0_i32_0 : i32, i32
  }
  func.func @transform_6(%arg0: i32) -> (i32, i32) {
    %c0_i32 = arith.constant 0 : i32
    %c0_i32_0 = arith.constant 0 : i32
    %c0_i32_1 = arith.constant 0 : i32
    return %c0_i32, %c0_i32_0 : i32, i32
  }
  func.func @transform_7(%arg0: i32) -> (i32, i32, i32) {
    %c0_i32 = arith.constant 0 : i32
    %c0_i32_0 = arith.constant 0 : i32
    %c0_i32_1 = arith.constant 0 : i32
    %c0_i32_2 = arith.constant 0 : i32
    return %c0_i32, %c0_i32_0, %c0_i32_1 : i32, i32, i32
  }
  func.func @transform_8(%arg0: i32) -> (i32, i32) {
    %c0_i32 = arith.constant 0 : i32
    %c0_i32_0 = arith.constant 0 : i32
    %c0_i32_1 = arith.constant 0 : i32
    return %c0_i32, %c0_i32_0 : i32, i32
  }
  func.func @transform_9(%arg0: i32) -> (i32, i32) {
    %c0_i32 = arith.constant 0 : i32
    %c0_i32_0 = arith.constant 0 : i32
    %c0_i32_1 = arith.constant 0 : i32
    return %c0_i32, %c0_i32_0 : i32, i32
  }
  func.func @transform_10(%arg0: i32) -> (i32, i32) {
    %c0_i32 = arith.constant 0 : i32
    %c0_i32_0 = arith.constant 0 : i32
    %c0_i32_1 = arith.constant 0 : i32
    return %c0_i32, %c0_i32_0 : i32, i32
  }
  func.func @transform_11(%arg0: i32) -> (i32, i32) {
    %c0_i32 = arith.constant 0 : i32
    %c0_i32_0 = arith.constant 0 : i32
    return %arg0, %c0_i32 : i32, i32
  }
}

</mosaic_0001>

<bundles_post_ra>
// kernel: simple_cnn_forward.1
= control target key start
LH: loop header
LB: loop body
LE: loop exit
PB: predicated region body
PF: predicated region fallthrough
CT: control target
= control target key end

     0   :  { %vm38_vm0 = vcmask 516096   ;;  %v1404_v3 = vmov 0.0   ;;  %vm71_vm1 = vcmask 523264   ;;  %s1405_s29 = smov 64   ;;  %vm1219_vm2 = vcmask 261120   ;;  %s2109_s1 = inlined_call_operand.vmem [shape: f32[3,64,128], index: 1, kind: input, shape index: {}]   ;;  %s2110_s0 = inlined_call_operand.vmem [shape: f32[8,16,64], index: 0, kind: input, shape index: {}]   ;;  %s2111_s2 = inlined_call_operand.vmem [shape: f32[1,128], index: 2, kind: input, shape index: {}]   ;;  %s2112_s3 = inlined_call_operand.vmem [shape: f32[128,128], index: 3, kind: input, shape index: {}]   ;;  %s2113_s4 = inlined_call_operand.vmem [shape: f32[3,64,128], index: 4, kind: input, shape index: {}]   ;;  %s2114_s5 = inlined_call_operand.vmem [shape: f32[1,128], index: 5, kind: input, shape index: {}]   ;;  %s2115_s6 = inlined_call_operand.vmem [shape: f32[64,64], index: 6, kind: input, shape index: {}]   ;;  %s2116_s7 = inlined_call_operand.vmem [shape: f32[4,64,32], index: 7, kind: input, shape index: {}]   ;;  %s2117_s8 = inlined_call_operand.vmem [shape: f32[1,32], index: 8, kind: input, shape index: {}]   ;;  %s2118_s10 = inlined_call_operand.vmem [shape: f32[1,128], index: 10, kind: input, shape index: {}]   ;;  %s2119_s9 = inlined_call_operand.vmem [shape: f32[32,128], index: 9, kind: input, shape index: {}]   ;;  %s2120_s11 = inlined_call_operand.vmem [shape: f32[8,128], index: 11, kind: output, shape index: {}]  }
   0x1   :  { %v1300_v0 = vld [vmem:[%s2109_s1 + $0xb8] sm:$0xff]  ;;  %v1299_v1 = vld [vmem:[%s2109_s1 + $0xb0] sm:$0xff]  ;;  %39 = vst.msk [vmem:[#allocation2] sm:$0x1] %vm38_vm0, %v1404_v3  ;;  %v1298_v6 = vld [vmem:[%s2109_s1 + $0xa8] sm:$0xff] }
   0x2   :  { %v1260_v2 = vld [vmem:[%s2109_s1 + $0x78] sm:$0xff]  ;;  %444 = vmatpush.msra.mxu2 %v1300_v0  ;;  %v1259_v5 = vld [vmem:[%s2109_s1 + $0x70] sm:$0xff]  ;;  %40 = vst.msk [vmem:[#allocation2 + $0x18] sm:$0x1] %vm38_vm0, %v1404_v3  ;;  %v1258_v8 = vld [vmem:[%s2109_s1 + $0x68] sm:$0xff] }
   0x3   :  { %193 = vmatpush.msra.mxu0 %v1260_v2  ;;  %v111_v4 = vld [vmem:[%s2109_s1 + $0x38] sm:$0xff]  ;;  %v110_v7 = vld [vmem:[%s2109_s1 + $0x30] sm:$0xff]  ;;  %41 = vst.msk [vmem:[#allocation2 + $0x30] sm:$0x1] %vm38_vm0, %v1404_v3  ;;  %v109_v9 = vld [vmem:[%s2109_s1 + $0x28] sm:$0xff] }
   0x4   :  { %306 = vmatpush.msra.mxu1 %v111_v4  ;;  %445 = vmatpush.msra.mxu2 %v1299_v1  ;;  %42 = vst.msk [vmem:[#allocation2 + $0x48] sm:$0x1] %vm38_vm0, %v1404_v3  ;;  %v1297_v10 = vld [vmem:[%s2109_s1 + $0xa0] sm:$0xff]  ;;  %v1296_v13 = vld [vmem:[%s2109_s1 + $0x98] sm:$0xff]  ;;  %v56_v17 = vld [vmem:[%s2110_s0 + $0x8] sm:$0xff] }
   0x5   :  { %194 = vmatpush.msra.mxu0 %v1259_v5  ;;  %v1257_v11 = vld [vmem:[%s2109_s1 + $0x60] sm:$0xff]  ;;  %43 = vst.msk [vmem:[#allocation2 + $0x60] sm:$0x1] %vm38_vm0, %v1404_v3  ;;  %v1256_v14 = vld [vmem:[%s2109_s1 + $0x58] sm:$0xff]  ;;  %v1295_v18 = vld [vmem:[%s2109_s1 + $0x90] sm:$0xff] }
   0x6   :  { %307 = vmatpush.msra.mxu1 %v110_v7  ;;  %446 = vmatpush.msra.mxu2 %v1298_v6  ;;  %v108_v12 = vld [vmem:[%s2109_s1 + $0x20] sm:$0xff]  ;;  %44 = vst.msk [vmem:[#allocation2 + $0x78] sm:$0x1] %vm38_vm0, %v1404_v3  ;;  %v107_v16 = vld [vmem:[%s2109_s1 + $0x18] sm:$0xff]  ;;  %v1255_v19 = vld [vmem:[%s2109_s1 + $0x50] sm:$0xff] }
   0x7   :  { %195 = vmatpush.msra.mxu0 %v1258_v8  ;;  %v55_v15 = vld [vmem:[%s2110_s0] sm:$0xff]  ;;  %45 = vst.msk [vmem:[#allocation2 + $0x90] sm:$0x1] %vm38_vm0, %v1404_v3  ;;  %v106_v20 = vld [vmem:[%s2109_s1 + $0x10] sm:$0xff]  ;;  %v1294_v21 = vld [vmem:[%s2109_s1 + $0x88] sm:$0xff] }
   0x8   :  { %308 = vmatpush.msra.mxu1 %v109_v9  ;;  %447 = vmatpush.msra.mxu2 %v1297_v10  ;;  %72 = vst.msk [vmem:[#allocation2 + $0x1] sm:$0xff] %vm71_vm1, %v55_v15  ;;  %v1254_v22 = vld [vmem:[%s2109_s1 + $0x48] sm:$0xff]  ;;  %v1293_v24 = vld [vmem:[%s2109_s1 + $0x80] sm:$0xff]  ;;  %v57_v33 = vld [vmem:[%s2110_s0 + $0x10] sm:$0xff] }
   0x9   :  { %196 = vmatpush.msra.mxu0 %v1257_v11  ;;  %73 = vst.msk [vmem:[#allocation2 + $0x9] sm:$0xff] %vm71_vm1, %v56_v17  ;;  %v105_v23 = vld [vmem:[%s2109_s1 + $0x8] sm:$0xff]  ;;  %v1253_v25 = vld [vmem:[%s2109_s1 + $0x40] sm:$0xff]  ;;  %v58_v34 = vld [vmem:[%s2110_s0 + $0x18] sm:$0xff] }
   0xa   :  { %309 = vmatpush.msra.mxu1 %v108_v12  ;;  %448 = vmatpush.msra.mxu2 %v1296_v13  ;;  %46 = vst.msk [vmem:[#allocation2 + $0xa8] sm:$0x1] %vm38_vm0, %v1404_v3  ;;  %v104_v26 = vld [vmem:[%s2109_s1] sm:$0xff]  ;;  %v60_v36 = vld [vmem:[%s2110_s0 + $0x28] sm:$0xff]  ;;  %v61_v37 = vld [vmem:[%s2110_s0 + $0x30] sm:$0xff] }
   0xb   :  { %197 = vmatpush.msra.mxu0 %v1256_v14  ;;  %47 = vst.msk [vmem:[#allocation2 + $0x11] sm:$0x1] %vm38_vm0, %v1404_v3  ;;  %v59_v35 = vld [vmem:[%s2110_s0 + $0x20] sm:$0xff]  ;;  %v62_v38 = vld [vmem:[%s2110_s0 + $0x38] sm:$0xff]  ;;  %v64_v46 = vld [vmem:[%s2110_s0 + $0x48] sm:$0xff] }
   0xc   :  { %310 = vmatpush.msra.mxu1 %v107_v16  ;;  %449 = vmatpush.msra.mxu2 %v1295_v18  ;;  %48 = vst.msk [vmem:[#allocation2 + $0x29] sm:$0x1] %vm38_vm0, %v1404_v3  ;;  %v63_v45 = vld [vmem:[%s2110_s0 + $0x40] sm:$0xff]  ;;  %v65_v53 = vld [vmem:[%s2110_s0 + $0x50] sm:$0xff]  ;;  %v66_v54 = vld [vmem:[%s2110_s0 + $0x58] sm:$0xff] }
   0xd   :  { %198 = vmatpush.msra.mxu0 %v1255_v19  ;;  %49 = vst.msk [vmem:[#allocation2 + $0x41] sm:$0x1] %vm38_vm0, %v1404_v3  ;;  %v67_v61 = vld [vmem:[%s2110_s0 + $0x60] sm:$0xff]  ;;  %v68_v62 = vld [vmem:[%s2110_s0 + $0x68] sm:$0xff]  ;;  %v69_v5 = vld [vmem:[%s2110_s0 + $0x70] sm:$0xff] }
   0xe   :  { %311 = vmatpush.msra.mxu1 %v106_v20  ;;  %450 = vmatpush.msra.mxu2 %v1294_v21  ;;  %50 = vst.msk [vmem:[#allocation2 + $0x59] sm:$0x1] %vm38_vm0, %v1404_v3  ;;  %v70_v6 = vld [vmem:[%s2110_s0 + $0x78] sm:$0xff] }
   0xf   :  { %199 = vmatpush.msra.mxu0 %v1254_v22  ;;  %v112_v27 = vld [vmem:[#allocation2 + $0x1] sm:$0xff]  ;;  %51 = vst.msk [vmem:[#allocation2 + $0x71] sm:$0x1] %vm38_vm0, %v1404_v3 }
  0x10   :  { %312 = vmatpush.msra.mxu1 %v105_v23  ;;  %v88_v28 = vld [vmem:[#allocation2] sm:$0xff]  ;;  %451 = vmatpush.msra.mxu2 %v1293_v24  ;;  %52 = vst.msk [vmem:[#allocation2 + $0x89] sm:$0x1] %vm38_vm0, %v1404_v3  ;;  %v113_v31 = vld [vmem:[#allocation2 + $0x9] sm:$0xff] }
  0x11   :  { %v363_v29 = vld [vmem:[#allocation2 + $0x2] sm:$0xff]  ;;  %200 = vmatpush.msra.mxu0 %v1253_v25  ;;  %53 = vst.msk [vmem:[#allocation2 + $0xa1] sm:$0x1] %vm38_vm0, %v1404_v3 }
  0x12   :  { %1301 = vmatmul.msk.f32.vlgmr.msra.gmra.mxu2 %vm71_vm1, %v363_v29  ;;  %313 = vmatpush.msra.mxu1 %v104_v26  ;;  %54 = vst.msk [vmem:[#allocation2 + $0xb9] sm:$0x1] %vm38_vm0, %v1404_v3  ;;  %v364_v30 = vld [vmem:[#allocation2 + $0xa] sm:$0xff] }
  0x13   :  { %1261 = vmatmul.msk.f32.vlgmr.msra.gmra.mxu0 %vm71_vm1, %v112_v27  ;;  %1277 = vmatmul.msk.f32.vlgmr.msra.gmra.mxu1 %vm71_vm1, %v88_v28  ;;  %682 = vst.msk [vmem:[#allocation3] sm:$0x1] %vm38_vm0, %v1404_v3  ;;  %v89_v32 = vld [vmem:[#allocation2 + $0x8] sm:$0xff] }
  0x14   :  { %683 = vst.msk [vmem:[#allocation3 + $0x10] sm:$0x1] %vm38_vm0, %v1404_v3 }
  0x15   :  { %684 = vst.msk [vmem:[#allocation3 + $0x20] sm:$0x1] %vm38_vm0, %v1404_v3 }
  0x16   :  { %685 = vst.msk [vmem:[#allocation3 + $0x30] sm:$0x1] %vm38_vm0, %v1404_v3 }
  0x17   :  { %686 = vst.msk [vmem:[#allocation3 + $0x40] sm:$0x1] %vm38_vm0, %v1404_v3 }
  0x18   :  { %687 = vst.msk [vmem:[#allocation3 + $0x50] sm:$0x1] %vm38_vm0, %v1404_v3 }
  0x19   :  { %688 = vst.msk [vmem:[#allocation3 + $0x60] sm:$0x1] %vm38_vm0, %v1404_v3 }
  0x1a   :  { %1302 = vmatmul.msk.f32.gmra.mxu2 %vm71_vm1, %v364_v30  ;;  %689 = vst.msk [vmem:[#allocation3 + $0x70] sm:$0x1] %vm38_vm0, %v1404_v3 }
  0x1b   :  { %1262 = vmatmul.msk.f32.gmra.mxu0 %vm71_vm1, %v113_v31  ;;  %1278 = vmatmul.msk.f32.gmra.mxu1 %vm71_vm1, %v89_v32  ;;  %690 = vst.msk [vmem:[#allocation3 + $0x9] sm:$0x1] %vm38_vm0, %v1404_v3 }
  0x1c   :  { %691 = vst.msk [vmem:[#allocation3 + $0x19] sm:$0x1] %vm38_vm0, %v1404_v3 }
  0x1d   :  { %692 = vst.msk [vmem:[#allocation3 + $0x29] sm:$0x1] %vm38_vm0, %v1404_v3 }
  0x1e   :  { %693 = vst.msk [vmem:[#allocation3 + $0x39] sm:$0x1] %vm38_vm0, %v1404_v3 }
  0x1f   :  { %694 = vst.msk [vmem:[#allocation3 + $0x49] sm:$0x1] %vm38_vm0, %v1404_v3 }
  0x20   :  { %695 = vst.msk [vmem:[#allocation3 + $0x59] sm:$0x1] %vm38_vm0, %v1404_v3 }
  0x21   :  { %696 = vst.msk [vmem:[#allocation3 + $0x69] sm:$0x1] %vm38_vm0, %v1404_v3 }
  0x22   :  { %697 = vst.msk [vmem:[#allocation3 + $0x79] sm:$0x1] %vm38_vm0, %v1404_v3 }
  0x23   :  { %74 = vst.msk [vmem:[#allocation2 + $0x19] sm:$0xff] %vm71_vm1, %v57_v33 }
  0x24   :  { %75 = vst.msk [vmem:[#allocation2 + $0x21] sm:$0xff] %vm71_vm1, %v58_v34 }
  0x25   :  { %76 = vst.msk [vmem:[#allocation2 + $0x31] sm:$0xff] %vm71_vm1, %v59_v35 }
  0x26   :  { %77 = vst.msk [vmem:[#allocation2 + $0x39] sm:$0xff] %vm71_vm1, %v60_v36 }
  0x27   :  { %78 = vst.msk [vmem:[#allocation2 + $0x49] sm:$0xff] %vm71_vm1, %v61_v37 }
  0x28   :  { %79 = vst.msk [vmem:[#allocation2 + $0x51] sm:$0xff] %vm71_vm1, %v62_v38 }
  0x29   :  { %80 = vst.msk [vmem:[#allocation2 + $0x61] sm:$0xff] %vm71_vm1, %v63_v45 }
  0x2a   :  { %v114_v39 = vld [vmem:[#allocation2 + $0x19] sm:$0xff]  ;;  %81 = vst.msk [vmem:[#allocation2 + $0x69] sm:$0xff] %vm71_vm1, %v64_v46 }
  0x2b   :  { %v90_v40 = vld [vmem:[#allocation2 + $0x18] sm:$0xff]  ;;  %1263 = vmatmul.msk.f32.gmra.mxu0 %vm71_vm1, %v114_v39  ;;  %v115_v42 = vld [vmem:[#allocation2 + $0x21] sm:$0xff]  ;;  %82 = vst.msk [vmem:[#allocation2 + $0x79] sm:$0xff] %vm71_vm1, %v65_v53 }
  0x2c   :  { %v365_v41 = vld [vmem:[#allocation2 + $0x1a] sm:$0xff]  ;;  %1279 = vmatmul.msk.f32.gmra.mxu1 %vm71_vm1, %v90_v40  ;;  %v366_v44 = vld [vmem:[#allocation2 + $0x22] sm:$0xff]  ;;  %v116_v47 = vld [vmem:[#allocation2 + $0x31] sm:$0xff]  ;;  %83 = vst.msk [vmem:[#allocation2 + $0x81] sm:$0xff] %vm71_vm1, %v66_v54 }
  0x2d   :  { %1303 = vmatmul.msk.f32.gmra.mxu2 %vm71_vm1, %v365_v41  ;;  %v91_v43 = vld [vmem:[#allocation2 + $0x20] sm:$0xff]  ;;  %v92_v48 = vld [vmem:[#allocation2 + $0x30] sm:$0xff]  ;;  %v93_v51 = vld [vmem:[#allocation2 + $0x38] sm:$0xff]  ;;  %84 = vst.msk [vmem:[#allocation2 + $0x91] sm:$0xff] %vm71_vm1, %v67_v61 }
  0x2e   :  { %v367_v49 = vld [vmem:[#allocation2 + $0x32] sm:$0xff]  ;;  %v368_v52 = vld [vmem:[#allocation2 + $0x3a] sm:$0xff]  ;;  %v118_v55 = vld [vmem:[#allocation2 + $0x49] sm:$0xff]  ;;  %85 = vst.msk [vmem:[#allocation2 + $0x99] sm:$0xff] %vm71_vm1, %v68_v62 }
  0x2f   :  { %v117_v50 = vld [vmem:[#allocation2 + $0x39] sm:$0xff]  ;;  %v94_v56 = vld [vmem:[#allocation2 + $0x48] sm:$0xff]  ;;  %v119_v58 = vld [vmem:[#allocation2 + $0x51] sm:$0xff]  ;;  %86 = vst.msk [vmem:[#allocation2 + $0xa9] sm:$0xff] %vm71_vm1, %v69_v5 }
  0x30   :  { %v369_v57 = vld [vmem:[#allocation2 + $0x4a] sm:$0xff]  ;;  %v370_v60 = vld [vmem:[#allocation2 + $0x52] sm:$0xff]  ;;  %v120_v63 = vld [vmem:[#allocation2 + $0x61] sm:$0xff]  ;;  %87 = vst.msk [vmem:[#allocation2 + $0xb1] sm:$0xff] %vm71_vm1, %v70_v6 }
  0x31   :  { %v95_v59 = vld [vmem:[#allocation2 + $0x50] sm:$0xff]  ;;  %v96_v0 = vld [vmem:[#allocation2 + $0x60] sm:$0xff]  ;;  %v97_v3 = vld [vmem:[#allocation2 + $0x68] sm:$0xff] }
  0x32   :  { %v371_v1 = vld [vmem:[#allocation2 + $0x62] sm:$0xff]  ;;  %v372_v4 = vld [vmem:[#allocation2 + $0x6a] sm:$0xff]  ;;  %v122_v7 = vld [vmem:[#allocation2 + $0x79] sm:$0xff] }
  0x33   :  { %1264 = vmatmul.msk.f32.gmra.mxu0 %vm71_vm1, %v115_v42  ;;  %v121_v2 = vld [vmem:[#allocation2 + $0x69] sm:$0xff]  ;;  %v98_v8 = vld [vmem:[#allocation2 + $0x78] sm:$0xff]  ;;  %v123_v10 = vld [vmem:[#allocation2 + $0x81] sm:$0xff] }
  0x34   :  { %1280 = vmatmul.msk.f32.gmra.mxu1 %vm71_vm1, %v91_v43  ;;  %v373_v9 = vld [vmem:[#allocation2 + $0x7a] sm:$0xff]  ;;  %v374_v12 = vld [vmem:[#allocation2 + $0x82] sm:$0xff]  ;;  %v124_v13 = vld [vmem:[#allocation2 + $0x91] sm:$0xff] }
  0x35   :  { %1304 = vmatmul.msk.f32.gmra.mxu2 %vm71_vm1, %v366_v44  ;;  %v99_v11 = vld [vmem:[#allocation2 + $0x80] sm:$0xff]  ;;  %v100_v14 = vld [vmem:[#allocation2 + $0x90] sm:$0xff]  ;;  %v101_v17 = vld [vmem:[#allocation2 + $0x98] sm:$0xff] }
  0x36   :  { %v375_v15 = vld [vmem:[#allocation2 + $0x92] sm:$0xff]  ;;  %v376_v18 = vld [vmem:[#allocation2 + $0x9a] sm:$0xff]  ;;  %v126_v19 = vld [vmem:[#allocation2 + $0xa9] sm:$0xff] }
  0x37   :  { %v125_v16 = vld [vmem:[#allocation2 + $0x99] sm:$0xff]  ;;  %v102_v20 = vld [vmem:[#allocation2 + $0xa8] sm:$0xff]  ;;  %v127_v22 = vld [vmem:[#allocation2 + $0xb1] sm:$0xff] }
  0x38   :  { %v377_v21 = vld [vmem:[#allocation2 + $0xaa] sm:$0xff]  ;;  %v378_v24 = vld [vmem:[#allocation2 + $0xb2] sm:$0xff] }
  0x39   :  { %v103_v23 = vld [vmem:[#allocation2 + $0xb0] sm:$0xff] }
  0x3b   :  { %1265 = vmatmul.msk.f32.gmra.mxu0 %vm71_vm1, %v116_v47 }
  0x3c   :  { %1281 = vmatmul.msk.f32.gmra.mxu1 %vm71_vm1, %v92_v48 }
  0x3d   :  { %1305 = vmatmul.msk.f32.gmra.mxu2 %vm71_vm1, %v367_v49 }
  0x43   :  { %1266 = vmatmul.msk.f32.gmra.mxu0 %vm71_vm1, %v117_v50 }
  0x44   :  { %1282 = vmatmul.msk.f32.gmra.mxu1 %vm71_vm1, %v93_v51 }
  0x45   :  { %1306 = vmatmul.msk.f32.gmra.mxu2 %vm71_vm1, %v368_v52 }
  0x4b   :  { %1267 = vmatmul.msk.f32.gmra.mxu0 %vm71_vm1, %v118_v55 }
  0x4c   :  { %1283 = vmatmul.msk.f32.gmra.mxu1 %vm71_vm1, %v94_v56 }
  0x4d   :  { %1307 = vmatmul.msk.f32.gmra.mxu2 %vm71_vm1, %v369_v57 }
  0x53   :  { %1268 = vmatmul.msk.f32.gmra.mxu0 %vm71_vm1, %v119_v58 }
  0x54   :  { %1284 = vmatmul.msk.f32.gmra.mxu1 %vm71_vm1, %v95_v59 }
  0x55   :  { %1308 = vmatmul.msk.f32.gmra.mxu2 %vm71_vm1, %v370_v60 }
  0x5b   :  { %1269 = vmatmul.msk.f32.gmra.mxu0 %vm71_vm1, %v120_v63 }
  0x5c   :  { %1285 = vmatmul.msk.f32.gmra.mxu1 %vm71_vm1, %v96_v0 }
  0x5d   :  { %1309 = vmatmul.msk.f32.gmra.mxu2 %vm71_vm1, %v371_v1 }
  0x63   :  { %1270 = vmatmul.msk.f32.gmra.mxu0 %vm71_vm1, %v121_v2 }
  0x64   :  { %1286 = vmatmul.msk.f32.gmra.mxu1 %vm71_vm1, %v97_v3 }
  0x65   :  { %1310 = vmatmul.msk.f32.gmra.mxu2 %vm71_vm1, %v372_v4 }
  0x6b   :  { %1271 = vmatmul.msk.f32.gmra.mxu0 %vm71_vm1, %v122_v7 }
  0x6c   :  { %1287 = vmatmul.msk.f32.gmra.mxu1 %vm71_vm1, %v98_v8 }
  0x6d   :  { %1311 = vmatmul.msk.f32.gmra.mxu2 %vm71_vm1, %v373_v9 }
  0x73   :  { %1272 = vmatmul.msk.f32.gmra.mxu0 %vm71_vm1, %v123_v10 }
  0x74   :  { %1288 = vmatmul.msk.f32.gmra.mxu1 %vm71_vm1, %v99_v11 }
  0x75   :  { %1312 = vmatmul.msk.f32.gmra.mxu2 %vm71_vm1, %v374_v12 }
  0x7b   :  { %1273 = vmatmul.msk.f32.gmra.mxu0 %vm71_vm1, %v124_v13 }
  0x7c   :  { %1289 = vmatmul.msk.f32.gmra.mxu1 %vm71_vm1, %v100_v14 }
  0x7d   :  { %1313 = vmatmul.msk.f32.gmra.mxu2 %vm71_vm1, %v375_v15 }
  0x83   :  { %1274 = vmatmul.msk.f32.gmra.mxu0 %vm71_vm1, %v125_v16 }
  0x84   :  { %1290 = vmatmul.msk.f32.gmra.mxu1 %vm71_vm1, %v101_v17 }
  0x85   :  { %1314 = vmatmul.msk.f32.gmra.mxu2 %vm71_vm1, %v376_v18 }
  0x8b   :  { %1275 = vmatmul.msk.f32.gmra.mxu0 %vm71_vm1, %v126_v19 }
  0x8c   :  { %1291 = vmatmul.msk.f32.gmra.mxu1 %vm71_vm1, %v102_v20 }
  0x8d   :  { %1315 = vmatmul.msk.f32.gmra.mxu2 %vm71_vm1, %v377_v21 }
  0x90   :  { %v1714_v25 = vpop.f32.mrf.mxu0  ;;  %v1716_v26 = vpop.f32.mrf.mxu1 }
  0x93   :  { %1276 = vmatmul.msk.f32.gmra.mxu0 %vm71_vm1, %v127_v22 }
  0x94   :  { %1292 = vmatmul.msk.f32.gmra.mxu1 %vm71_vm1, %v103_v23 }
  0x95   :  { %1316 = vmatmul.msk.f32.gmra.mxu2 %vm71_vm1, %v378_v24  ;;  %v1718_v27 = vpop.f32.mrf.mxu2 }
  0x98   :  { %v1720_v28 = vpop.f32.mrf.mxu0  ;;  %v1722_v29 = vpop.f32.mrf.mxu1 }
  0x9d   :  { %v1724_v30 = vpop.f32.mrf.mxu2 }
  0xa8   :  { %v208_v31 = vpop.f32.mrf.mxu0 }
  0xa9   :  { %v321_v32 = vpop.f32.mrf.mxu1 }
  0xaa   :  { %v322_v33 = vadd.f32 %v321_v32, %v208_v31 }
  0xb0   :  { %v459_v34 = vpop.f32.mrf.mxu2  ;;  %v211_v36 = vpop.f32.mrf.mxu0 }
  0xb1   :  { %v1726_v35 = vadd.f32 %v459_v34, %v322_v33  ;;  %v324_v37 = vpop.f32.mrf.mxu1 }
  0xb2   :  { %v325_v38 = vadd.f32 %v324_v37, %v211_v36 }
  0xb8   :  { %v462_v39 = vpop.f32.mrf.mxu2  ;;  %v214_v41 = vpop.f32.mrf.mxu0 }
  0xb9   :  { %v1728_v40 = vadd.f32 %v462_v39, %v325_v38  ;;  %v327_v42 = vpop.f32.mrf.mxu1  ;;  %v1396_v38 = vld [vmem:[%s2111_s2] ss:$0 sm:$0xff] }
  0xba   :  { %v328_v43 = vadd.f32 %v327_v42, %v214_v41 }
  0xc0   :  { %v465_v44 = vpop.f32.mrf.mxu2  ;;  %v217_v46 = vpop.f32.mrf.mxu0 }
  0xc1   :  { %v1730_v45 = vadd.f32 %v465_v44, %v328_v43  ;;  %v330_v47 = vpop.f32.mrf.mxu1 }
  0xc2   :  { %v331_v48 = vadd.f32 %v330_v47, %v217_v46 }
  0xc8   :  { %v468_v49 = vpop.f32.mrf.mxu2  ;;  %v220_v51 = vpop.f32.mrf.mxu0 }
  0xc9   :  { %v1732_v50 = vadd.f32 %v468_v49, %v331_v48  ;;  %v333_v52 = vpop.f32.mrf.mxu1 }
  0xca   :  { %v334_v53 = vadd.f32 %v333_v52, %v220_v51 }
  0xd0   :  { %v471_v54 = vpop.f32.mrf.mxu2  ;;  %v223_v56 = vpop.f32.mrf.mxu0 }
  0xd1   :  { %v1734_v55 = vadd.f32 %v471_v54, %v334_v53  ;;  %v336_v57 = vpop.f32.mrf.mxu1 }
  0xd2   :  { %v337_v58 = vadd.f32 %v336_v57, %v223_v56 }
  0xd8   :  { %v474_v59 = vpop.f32.mrf.mxu2  ;;  %v226_v61 = vpop.f32.mrf.mxu0 }
  0xd9   :  { %v1736_v60 = vadd.f32 %v474_v59, %v337_v58  ;;  %v339_v62 = vpop.f32.mrf.mxu1 }
  0xda   :  { %v340_v63 = vadd.f32 %v339_v62, %v226_v61 }
  0xe0   :  { %v477_v0 = vpop.f32.mrf.mxu2  ;;  %v229_v2 = vpop.f32.mrf.mxu0 }
  0xe1   :  { %v509_v1 = vadd.f32 %v477_v0, %v340_v63  ;;  %v342_v3 = vpop.f32.mrf.mxu1 }
  0xe2   :  { %v343_v44 = vadd.f32 %v342_v3, %v229_v2  ;;  %v528_v2 = vadd.f32 %v1396_v38, %v1736_v60 }
  0xe3   :  { %v529_v63 = vadd.f32 %v1396_v38, %v509_v1 }
  0xe5   :  { %v545_v3 = vmax.f32 %v529_v63, 0.0 }
  0xe8   :  { %v480_v4 = vpop.f32.mrf.mxu2  ;;  %v232_v5 = vpop.f32.mrf.mxu0 }
  0xe9   :  { %v345_v6 = vpop.f32.mrf.mxu1  ;;  %v510_v53 = vadd.f32 %v480_v4, %v343_v44  ;;  %v527_v4 = vadd.f32 %v1396_v38, %v1734_v55  ;;  %v524_v55 = vadd.f32 %v1396_v38, %v1728_v40  ;;  %v553_v40 = vld [vmem:[%s2112_s3] sm:$0xff] }
  0xea   :  { %v346_v39 = vadd.f32 %v345_v6, %v232_v5  ;;  %v319_v5 = vadd.f32 %v1722_v29, %v1720_v28  ;;  %v544_v6 = vmax.f32 %v528_v2, 0.0  ;;  %v523_v29 = vadd.f32 %v1396_v38, %v1726_v35  ;;  %v555_v35 = vld [vmem:[%s2112_s3 + $0x10] sm:$0xff] }
  0xeb   :  { %v530_v61 = vadd.f32 %v1396_v38, %v510_v53  ;;  %v543_v1 = vmax.f32 %v527_v4, 0.0  ;;  %v721_v53 = vld [vmem:[%s2113_s4 + $0x38] sm:$0xff] }
  0xec   :  { %v502_v60 = vadd.f32 %v1724_v30, %v319_v5  ;;  %836 = vmatpush.msrb.mxu1 %v721_v53 }
  0xed   :  { %v546_v0 = vmax.f32 %v530_v61, 0.0  ;;  %v719_v61 = vld [vmem:[%s2113_s4 + $0x28] sm:$0xff] }
  0xf0   :  { %v483_v7 = vpop.f32.mrf.mxu2  ;;  %v235_v8 = vpop.f32.mrf.mxu0 }
  0xf1   :  { %v348_v9 = vpop.f32.mrf.mxu1  ;;  %v511_v49 = vadd.f32 %v483_v7, %v346_v39  ;;  %v526_v7 = vadd.f32 %v1396_v38, %v1732_v50  ;;  %v540_v50 = vmax.f32 %v524_v55, 0.0  ;;  %v1344_v55 = vld [vmem:[%s2113_s4 + $0x98] sm:$0xff] }
  0xf2   :  { %v349_v34 = vadd.f32 %v348_v9, %v235_v8  ;;  %v316_v8 = vadd.f32 %v1716_v26, %v1714_v25  ;;  %v525_v9 = vadd.f32 %v1396_v38, %v1730_v45  ;;  %v539_v25 = vmax.f32 %v523_v29, 0.0  ;;  %v1343_v29 = vld [vmem:[%s2113_s4 + $0x90] sm:$0xff] }
  0xf3   :  { %v531_v58 = vadd.f32 %v1396_v38, %v511_v49 }
  0xf4   :  { %v541_v28 = vmax.f32 %v525_v9, 0.0  ;;  %v1345_v9 = vld [vmem:[%s2113_s4 + $0xa0] sm:$0xff] }
  0xf5   :  { %v547_v62 = vmax.f32 %v531_v58, 0.0  ;;  %v1347_v58 = vld [vmem:[%s2113_s4 + $0xb0] sm:$0xff] }
  0xf8   :  { %v486_v10 = vpop.f32.mrf.mxu2  ;;  %v238_v11 = vpop.f32.mrf.mxu0 }
  0xf9   :  { %v351_v12 = vpop.f32.mrf.mxu1  ;;  %v512_v46 = vadd.f32 %v486_v10, %v349_v34  ;;  %v542_v10 = vmax.f32 %v526_v7, 0.0 }
  0xfa   :  { %v352_v31 = vadd.f32 %v351_v12, %v238_v11  ;;  %v501_v11 = vadd.f32 %v1718_v27, %v316_v8  ;;  %v522_v12 = vadd.f32 %v1396_v38, %v502_v60  ;;  %v554_v27 = vld [vmem:[%s2112_s3 + $0x8] sm:$0xff]  ;;  %v1321_v8 = vld [vmem:[%s2113_s4 + $0x60] sm:$0xff]  ;;  %v1320_v60 = vld [vmem:[%s2113_s4 + $0x58] sm:$0xff] }
  0xfb   :  { %v532_v56 = vadd.f32 %v1396_v38, %v512_v46 }
  0xfc   :  { %v521_v26 = vadd.f32 %v1396_v38, %v501_v11  ;;  %v538_v45 = vmax.f32 %v522_v12, 0.0  ;;  %v1319_v11 = vld [vmem:[%s2113_s4 + $0x50] sm:$0xff]  ;;  %v715_v12 = vld [vmem:[%s2113_s4 + $0x8] sm:$0xff] }
  0xfd   :  { %v548_v59 = vmax.f32 %v532_v56, 0.0  ;;  %v1323_v56 = vld [vmem:[%s2113_s4 + $0x70] sm:$0xff] }
  0xfe   :  { %v537_v30 = vmax.f32 %v521_v26, 0.0  ;;  %v1317_v26 = vld [vmem:[%s2113_s4 + $0x40] sm:$0xff] }
 0x100   :  { %v489_v13 = vpop.f32.mrf.mxu2  ;;  %v241_v14 = vpop.f32.mrf.mxu0 }
 0x101   :  { %v354_v15 = vpop.f32.mrf.mxu1  ;;  %v513_v41 = vadd.f32 %v489_v13, %v352_v31  ;;  %v556_v13 = vld [vmem:[%s2112_s3 + $0x18] sm:$0xff] }
 0x102   :  { %v355_v23 = vadd.f32 %v354_v15, %v241_v14  ;;  %v557_v14 = vld [vmem:[%s2112_s3 + $0x20] sm:$0xff]  ;;  %v558_v15 = vld [vmem:[%s2112_s3 + $0x28] sm:$0xff]  ;;  %v568_v31 = vld [vmem:[%s2112_s3 + $0x78] sm:$0xff] }
 0x103   :  { %v533_v52 = vadd.f32 %v1396_v38, %v513_v41 }
 0x105   :  { %v549_v57 = vmax.f32 %v533_v52, 0.0  ;;  %v1324_v52 = vld [vmem:[%s2113_s4 + $0x78] sm:$0xff] }
 0x106   :  { %771 = vmatpush.msrb.mxu0 %v1324_v52 }
 0x108   :  { %v492_v16 = vpop.f32.mrf.mxu2  ;;  %v244_v17 = vpop.f32.mrf.mxu0  ;;  %772 = vmatpush.msrb.mxu0 %v1323_v56 }
 0x109   :  { %v357_v18 = vpop.f32.mrf.mxu1  ;;  %v514_v36 = vadd.f32 %v492_v16, %v355_v23  ;;  %v559_v16 = vld [vmem:[%s2112_s3 + $0x30] sm:$0xff]  ;;  %v566_v23 = vld [vmem:[%s2112_s3 + $0x68] sm:$0xff] }
 0x10a   :  { %v358_v22 = vadd.f32 %v357_v18, %v244_v17  ;;  %v560_v17 = vld [vmem:[%s2112_s3 + $0x38] sm:$0xff]  ;;  %v561_v18 = vld [vmem:[%s2112_s3 + $0x40] sm:$0xff] }
 0x10b   :  { %v534_v48 = vadd.f32 %v1396_v38, %v514_v36 }
 0x10d   :  { %v550_v54 = vmax.f32 %v534_v48, 0.0 }
 0x110   :  { %v495_v19 = vpop.f32.mrf.mxu2  ;;  %v247_v20 = vpop.f32.mrf.mxu0 }
 0x111   :  { %v360_v21 = vpop.f32.mrf.mxu1  ;;  %v515_v32 = vadd.f32 %v495_v19, %v358_v22  ;;  %v562_v19 = vld [vmem:[%s2112_s3 + $0x48] sm:$0xff]  ;;  %v565_v22 = vld [vmem:[%s2112_s3 + $0x60] sm:$0xff] }
 0x112   :  { %v361_v24 = vadd.f32 %v360_v21, %v247_v20  ;;  %v563_v20 = vld [vmem:[%s2112_s3 + $0x50] sm:$0xff]  ;;  %v564_v21 = vld [vmem:[%s2112_s3 + $0x58] sm:$0xff] }
 0x113   :  { %v535_v43 = vadd.f32 %v1396_v38, %v515_v32 }
 0x115   :  { %v551_v51 = vmax.f32 %v535_v43, 0.0 }
 0x118   :  { %v498_v33 = vpop.f32.mrf.mxu2 }
 0x119   :  { %v516_v37 = vadd.f32 %v498_v33, %v361_v24  ;;  %v567_v24 = vld [vmem:[%s2112_s3 + $0x70] sm:$0xff] }
 0x11b   :  { %v536_v42 = vadd.f32 %v1396_v38, %v516_v37 }
 0x11d   :  { %v552_v47 = vmax.f32 %v536_v42, 0.0 }
 0x11f   :  { %569 = vmatpush.msra.mxu3 %v552_v47 }
 0x121   :  { %570 = vmatpush.msra.mxu3 %v551_v51 }
 0x123   :  { %571 = vmatpush.msra.mxu3 %v550_v54  ;;  %v1348_v54 = vld [vmem:[%s2113_s4 + $0xb8] sm:$0xff] }
 0x124   :  { %918 = vmatpush.msrb.mxu2 %v1348_v54 }
 0x125   :  { %572 = vmatpush.msra.mxu3 %v549_v57  ;;  %v720_v57 = vld [vmem:[%s2113_s4 + $0x30] sm:$0xff] }
 0x126   :  { %837 = vmatpush.msrb.mxu1 %v720_v57  ;;  %919 = vmatpush.msrb.mxu2 %v1347_v58 }
 0x127   :  { %573 = vmatpush.msra.mxu3 %v548_v59  ;;  %v1322_v59 = vld [vmem:[%s2113_s4 + $0x68] sm:$0xff] }
 0x128   :  { %773 = vmatpush.msrb.mxu0 %v1322_v59  ;;  %838 = vmatpush.msrb.mxu1 %v719_v61 }
 0x129   :  { %574 = vmatpush.msra.mxu3 %v547_v62  ;;  %v1346_v62 = vld [vmem:[%s2113_s4 + $0xa8] sm:$0xff] }
 0x12a   :  { %920 = vmatpush.msrb.mxu2 %v1346_v62  ;;  %774 = vmatpush.msrb.mxu0 %v1321_v8 }
 0x12b   :  { %575 = vmatpush.msra.mxu3 %v546_v0 }
 0x12c   :  { %921 = vmatpush.msrb.mxu2 %v1345_v9  ;;  %775 = vmatpush.msrb.mxu0 %v1320_v60 }
 0x12d   :  { %576 = vmatpush.msra.mxu3 %v545_v3 }
 0x12e   :  { %922 = vmatpush.msrb.mxu2 %v1344_v55  ;;  %776 = vmatpush.msrb.mxu0 %v1319_v11 }
 0x12f   :  { %577 = vmatpush.msra.mxu3 %v544_v6 }
 0x130   :  { %923 = vmatpush.msrb.mxu2 %v1343_v29 }
 0x131   :  { %578 = vmatpush.msra.mxu3 %v543_v1  ;;  %v718_v1 = vld [vmem:[%s2113_s4 + $0x20] sm:$0xff] }
 0x132   :  { %839 = vmatpush.msrb.mxu1 %v718_v1 }
 0x133   :  { %579 = vmatpush.msra.mxu3 %v542_v10  ;;  %v717_v10 = vld [vmem:[%s2113_s4 + $0x18] sm:$0xff] }
 0x134   :  { %840 = vmatpush.msrb.mxu1 %v717_v10 }
 0x135   :  { %580 = vmatpush.msra.mxu3 %v541_v28  ;;  %v716_v28 = vld [vmem:[%s2113_s4 + $0x10] sm:$0xff] }
 0x136   :  { %841 = vmatpush.msrb.mxu1 %v716_v28 }
 0x137   :  { %581 = vmatpush.msra.mxu3 %v540_v50  ;;  %v1318_v50 = vld [vmem:[%s2113_s4 + $0x48] sm:$0xff] }
 0x138   :  { %777 = vmatpush.msrb.mxu0 %v1318_v50  ;;  %842 = vmatpush.msrb.mxu1 %v715_v12 }
 0x139   :  { %582 = vmatpush.msra.mxu3 %v539_v25  ;;  %v1342_v25 = vld [vmem:[%s2113_s4 + $0x88] sm:$0xff] }
 0x13a   :  { %924 = vmatpush.msrb.mxu2 %v1342_v25  ;;  %778 = vmatpush.msrb.mxu0 %v1317_v26 }
 0x13b   :  { %583 = vmatpush.msra.mxu3 %v538_v45  ;;  %v714_v45 = vld [vmem:[%s2113_s4] sm:$0xff] }
 0x13c   :  { %843 = vmatpush.msrb.mxu1 %v714_v45 }
 0x13d   :  { %584 = vmatpush.msra.mxu3 %v537_v30  ;;  %v1341_v30 = vld [vmem:[%s2113_s4 + $0x80] sm:$0xff] }
 0x13e   :  { %585 = vmatmul.f32.vlgmr.msra.gmra.mxu3 %v553_v40  ;;  %925 = vmatpush.msrb.mxu2 %v1341_v30 }
 0x146   :  { %588 = vmatmul.f32.gmra.mxu3 %v554_v27 }
 0x14e   :  { %591 = vmatmul.f32.gmra.mxu3 %v555_v35 }
 0x156   :  { %594 = vmatmul.f32.gmra.mxu3 %v556_v13 }
 0x15e   :  { %597 = vmatmul.f32.gmra.mxu3 %v557_v14 }
 0x166   :  { %600 = vmatmul.f32.gmra.mxu3 %v558_v15 }
 0x16e   :  { %603 = vmatmul.f32.gmra.mxu3 %v559_v16 }
 0x176   :  { %606 = vmatmul.f32.gmra.mxu3 %v560_v17 }
 0x17e   :  { %609 = vmatmul.f32.gmra.mxu3 %v561_v18 }
 0x186   :  { %612 = vmatmul.f32.gmra.mxu3 %v562_v19 }
 0x18e   :  { %615 = vmatmul.f32.gmra.mxu3 %v563_v20 }
 0x196   :  { %618 = vmatmul.f32.gmra.mxu3 %v564_v21 }
 0x19e   :  { %621 = vmatmul.f32.gmra.mxu3 %v565_v22 }
 0x1a6   :  { %624 = vmatmul.f32.gmra.mxu3 %v566_v23 }
 0x1ae   :  { %627 = vmatmul.f32.gmra.mxu3 %v567_v24 }
 0x1b6   :  { %630 = vmatmul.f32.gmra.mxu3 %v568_v31 }
 0x1c1   :  { %v586_v32 = vpop.f32.mrf.mxu3 }
 0x1c9   :  { %v589_v33 = vpop.f32.mrf.mxu3 }
 0x1d1   :  { %v592_v34 = vpop.f32.mrf.mxu3 }
 0x1d9   :  { %v595_v36 = vpop.f32.mrf.mxu3 }
 0x1e1   :  { %v598_v37 = vpop.f32.mrf.mxu3 }
 0x1e9   :  { %v601_v38 = vpop.f32.mrf.mxu3 }
 0x1f1   :  { %v604_v39 = vpop.f32.mrf.mxu3 }
 0x1f9   :  { %v607_v41 = vpop.f32.mrf.mxu3 }
 0x201   :  { %v610_v42 = vpop.f32.mrf.mxu3 }
 0x202   :  { %v1801_v43 = vmax.f32 %v586_v32, %v610_v42 }
 0x204   :  { %650 = vrot.lane.b32.xlu0 %v1801_v43, %s1405_s29 }
 0x209   :  { %v613_v44 = vpop.f32.mrf.mxu3 }
 0x20a   :  { %v1805_v46 = vmax.f32 %v589_v33, %v613_v44 }
 0x20c   :  { %652 = vrot.lane.b32.xlu0 %v1805_v46, %s1405_s29 }
 0x211   :  { %v616_v47 = vpop.f32.mrf.mxu3 }
 0x212   :  { %v1809_v48 = vmax.f32 %v592_v34, %v616_v47 }
 0x214   :  { %654 = vrot.lane.b32.xlu1 %v1809_v48, %s1405_s29 }
 0x219   :  { %v619_v49 = vpop.f32.mrf.mxu3 }
 0x21a   :  { %v1813_v51 = vmax.f32 %v595_v36, %v619_v49 }
 0x21c   :  { %656 = vrot.lane.b32.xlu1 %v1813_v51, %s1405_s29 }
 0x221   :  { %v622_v63 = vpop.f32.mrf.mxu3 }
 0x222   :  { %v638_v0 = vmax.f32 %v598_v37, %v622_v63 }
 0x224   :  { %658 = vrot.lane.b32.xlu2 %v638_v0, %s1405_s29 }
 0x229   :  { %v625_v2 = vpop.f32.mrf.mxu3 }
 0x22a   :  { %v1845_v3 = vmax.f32 %v601_v38, %v625_v2 }
 0x22c   :  { %660 = vrot.lane.b32.xlu2 %v1845_v3, %s1405_s29 }
 0x231   :  { %v628_v4 = vpop.f32.mrf.mxu3 }
 0x232   :  { %v1849_v5 = vmax.f32 %v604_v39, %v628_v4 }
 0x234   :  { %662 = vrot.lane.b32.xlu0 %v1849_v5, %s1405_s29 }
 0x239   :  { %v631_v6 = vpop.f32.mrf.mxu3 }
 0x23a   :  { %v1853_v7 = vmax.f32 %v607_v41, %v631_v6 }
 0x23c   :  { %664 = vrot.lane.b32.xlu1 %v1853_v7, %s1405_s29 }
 0x276   :  { %v651_v40 = vpop.permute.xlu0 %650 }
 0x277   :  { %v674_v27 = vmax.f32 %v1801_v43, %v651_v40 }
 0x279   :  { %698 = vst.msk [vmem:[#allocation3 + $0x1] sm:$0xff] %vm71_vm1, %v674_v27 }
 0x27e   :  { %v653_v35 = vpop.permute.xlu0 %652  ;;  %v659_v13 = vpop.permute.xlu2 %658 }
 0x27f   :  { %v675_v14 = vmax.f32 %v1805_v46, %v653_v35  ;;  %v678_v15 = vmax.f32 %v638_v0, %v659_v13 }
 0x280   :  { %v722_v16 = vld [vmem:[#allocation3 + $0x1] sm:$0xff] }
 0x281   :  { %v706_v17 = vld [vmem:[#allocation3] sm:$0xff]  ;;  %699 = vst.msk [vmem:[#allocation3 + $0x11] sm:$0xff] %vm71_vm1, %v675_v14  ;;  %1325 = vmatmul.msk.f32.vlgmr.msrb.gmra.mxu0 %vm71_vm1, %v722_v16 }
 0x282   :  { %v869_v18 = vld [vmem:[#allocation3 + $0x2] sm:$0xff]  ;;  %1333 = vmatmul.msk.f32.vlgmr.msrb.gmra.mxu1 %vm71_vm1, %v706_v17  ;;  %702 = vst.msk [vmem:[#allocation3 + $0x41] sm:$0xff] %vm71_vm1, %v678_v15 }
 0x283   :  { %1349 = vmatmul.msk.f32.vlgmr.msrb.gmra.mxu2 %vm71_vm1, %v869_v18 }
 0x286   :  { %v655_v19 = vpop.permute.xlu1 %654  ;;  %v661_v20 = vpop.permute.xlu2 %660 }
 0x287   :  { %v676_v21 = vmax.f32 %v1809_v48, %v655_v19  ;;  %v679_v22 = vmax.f32 %v1845_v3, %v661_v20  ;;  %v1397_v19 = vld [vmem:[%s2114_s5] ss:$0 sm:$0xff] }
 0x288   :  { %v723_v23 = vld [vmem:[#allocation3 + $0x11] sm:$0xff] }
 0x289   :  { %v707_v24 = vld [vmem:[#allocation3 + $0x10] sm:$0xff]  ;;  %700 = vst.msk [vmem:[#allocation3 + $0x21] sm:$0xff] %vm71_vm1, %v676_v21  ;;  %1326 = vmatmul.msk.f32.gmra.mxu0 %vm71_vm1, %v723_v23  ;;  %v726_v42 = vld [vmem:[#allocation3 + $0x41] sm:$0xff] }
 0x28a   :  { %v870_v31 = vld [vmem:[#allocation3 + $0x12] sm:$0xff]  ;;  %1334 = vmatmul.msk.f32.gmra.mxu1 %vm71_vm1, %v707_v24  ;;  %703 = vst.msk [vmem:[#allocation3 + $0x51] sm:$0xff] %vm71_vm1, %v679_v22  ;;  %v710_v43 = vld [vmem:[#allocation3 + $0x40] sm:$0xff] }
 0x28b   :  { %1350 = vmatmul.msk.f32.gmra.mxu2 %vm71_vm1, %v870_v31  ;;  %v873_v44 = vld [vmem:[#allocation3 + $0x42] sm:$0xff] }
 0x28e   :  { %v657_v32 = vpop.permute.xlu1 %656 }
 0x28f   :  { %v677_v33 = vmax.f32 %v1813_v51, %v657_v32 }
 0x290   :  { %v724_v34 = vld [vmem:[#allocation3 + $0x21] sm:$0xff] }
 0x291   :  { %v708_v36 = vld [vmem:[#allocation3 + $0x20] sm:$0xff]  ;;  %701 = vst.msk [vmem:[#allocation3 + $0x31] sm:$0xff] %vm71_vm1, %v677_v33  ;;  %1327 = vmatmul.msk.f32.gmra.mxu0 %vm71_vm1, %v724_v34  ;;  %v727_v48 = vld [vmem:[#allocation3 + $0x51] sm:$0xff] }
 0x292   :  { %v871_v37 = vld [vmem:[#allocation3 + $0x22] sm:$0xff]  ;;  %1335 = vmatmul.msk.f32.gmra.mxu1 %vm71_vm1, %v708_v36  ;;  %v711_v49 = vld [vmem:[#allocation3 + $0x50] sm:$0xff] }
 0x293   :  { %1351 = vmatmul.msk.f32.gmra.mxu2 %vm71_vm1, %v871_v37  ;;  %v874_v51 = vld [vmem:[#allocation3 + $0x52] sm:$0xff] }
 0x298   :  { %v725_v38 = vld [vmem:[#allocation3 + $0x31] sm:$0xff] }
 0x299   :  { %v709_v39 = vld [vmem:[#allocation3 + $0x30] sm:$0xff]  ;;  %1328 = vmatmul.msk.f32.gmra.mxu0 %vm71_vm1, %v725_v38 }
 0x29a   :  { %v872_v41 = vld [vmem:[#allocation3 + $0x32] sm:$0xff]  ;;  %1336 = vmatmul.msk.f32.gmra.mxu1 %vm71_vm1, %v709_v39 }
 0x29b   :  { %1352 = vmatmul.msk.f32.gmra.mxu2 %vm71_vm1, %v872_v41 }
 0x2a1   :  { %1329 = vmatmul.msk.f32.gmra.mxu0 %vm71_vm1, %v726_v42 }
 0x2a2   :  { %1337 = vmatmul.msk.f32.gmra.mxu1 %vm71_vm1, %v710_v43 }
 0x2a3   :  { %1353 = vmatmul.msk.f32.gmra.mxu2 %vm71_vm1, %v873_v44 }
 0x2a6   :  { %v663_v46 = vpop.permute.xlu0 %662 }
 0x2a7   :  { %v680_v47 = vmax.f32 %v1849_v5, %v663_v46 }
 0x2a9   :  { %704 = vst.msk [vmem:[#allocation3 + $0x61] sm:$0xff] %vm71_vm1, %v680_v47  ;;  %1330 = vmatmul.msk.f32.gmra.mxu0 %vm71_vm1, %v727_v48 }
 0x2aa   :  { %1338 = vmatmul.msk.f32.gmra.mxu1 %vm71_vm1, %v711_v49 }
 0x2ab   :  { %1354 = vmatmul.msk.f32.gmra.mxu2 %vm71_vm1, %v874_v51 }
 0x2ae   :  { %v665_v52 = vpop.permute.xlu1 %664 }
 0x2af   :  { %v681_v53 = vmax.f32 %v1853_v7, %v665_v52 }
 0x2b0   :  { %v728_v54 = vld [vmem:[#allocation3 + $0x61] sm:$0xff] }
 0x2b1   :  { %v712_v56 = vld [vmem:[#allocation3 + $0x60] sm:$0xff]  ;;  %705 = vst.msk [vmem:[#allocation3 + $0x71] sm:$0xff] %vm71_vm1, %v681_v53  ;;  %1331 = vmatmul.msk.f32.gmra.mxu0 %vm71_vm1, %v728_v54  ;;  %v980_v54 = vld [vmem:[%s2115_s6 + $0x8] sm:$0xff] }
 0x2b2   :  { %v875_v57 = vld [vmem:[#allocation3 + $0x62] sm:$0xff]  ;;  %1339 = vmatmul.msk.f32.gmra.mxu1 %vm71_vm1, %v712_v56  ;;  %v981_v56 = vld [vmem:[%s2115_s6 + $0x10] sm:$0xff] }
 0x2b3   :  { %1355 = vmatmul.msk.f32.gmra.mxu2 %vm71_vm1, %v875_v57  ;;  %v979_v53 = vld [vmem:[%s2115_s6] sm:$0xff]  ;;  %v982_v57 = vld [vmem:[%s2115_s6 + $0x18] sm:$0xff] }
 0x2b8   :  { %v729_v58 = vld [vmem:[#allocation3 + $0x71] sm:$0xff] }
 0x2b9   :  { %v713_v59 = vld [vmem:[#allocation3 + $0x70] sm:$0xff]  ;;  %1332 = vmatmul.msk.f32.gmra.mxu0 %vm71_vm1, %v729_v58  ;;  %v983_v58 = vld [vmem:[%s2115_s6 + $0x20] sm:$0xff] }
 0x2ba   :  { %v876_v61 = vld [vmem:[#allocation3 + $0x72] sm:$0xff]  ;;  %1340 = vmatmul.msk.f32.gmra.mxu1 %vm71_vm1, %v713_v59  ;;  %v984_v59 = vld [vmem:[%s2115_s6 + $0x28] sm:$0xff] }
 0x2bb   :  { %1356 = vmatmul.msk.f32.gmra.mxu2 %vm71_vm1, %v876_v61  ;;  %v985_v61 = vld [vmem:[%s2115_s6 + $0x30] sm:$0xff] }
 0x2fe   :  { %v780_v62 = vpop.f32.mrf.mxu0 }
 0x2ff   :  { %v845_v63 = vpop.f32.mrf.mxu1 }
 0x300   :  { %v846_v0 = vadd.f32 %v845_v63, %v780_v62  ;;  %v986_v62 = vld [vmem:[%s2115_s6 + $0x38] sm:$0xff] }
 0x306   :  { %v927_v2 = vpop.f32.mrf.mxu2  ;;  %v783_v4 = vpop.f32.mrf.mxu0 }
 0x307   :  { %v951_v3 = vadd.f32 %v927_v2, %v846_v0  ;;  %v848_v5 = vpop.f32.mrf.mxu1 }
 0x308   :  { %v849_v34 = vadd.f32 %v848_v5, %v783_v4  ;;  %v1372_v4 = vld [vmem:[%s2116_s7 + $0x78] sm:$0xff]  ;;  %v1371_v5 = vld [vmem:[%s2116_s7 + $0x70] sm:$0xff] }
 0x309   :  { %v963_v49 = vadd.f32 %v1397_v19, %v951_v3  ;;  %1104 = vmatpush.msra.mxu0 %v1372_v4 }
 0x30b   :  { %v971_v52 = vmax.f32 %v963_v49, 0.0  ;;  %1105 = vmatpush.msra.mxu0 %v1371_v5  ;;  %v1213_v49 = vld [vmem:[%s2119_s9 + $0x10] sm:$0xff] }
 0x30e   :  { %v930_v6 = vpop.f32.mrf.mxu2  ;;  %v786_v7 = vpop.f32.mrf.mxu0 }
 0x30f   :  { %v851_v8 = vpop.f32.mrf.mxu1  ;;  %v952_v39 = vadd.f32 %v930_v6, %v849_v34  ;;  %v1370_v6 = vld [vmem:[%s2116_s7 + $0x68] sm:$0xff]  ;;  %v1377_v34 = vld [vmem:[%s2116_s7 + $0x90] sm:$0xff] }
 0x310   :  { %v852_v24 = vadd.f32 %v851_v8, %v786_v7  ;;  %v1369_v7 = vld [vmem:[%s2116_s7 + $0x60] sm:$0xff]  ;;  %1106 = vmatpush.msra.mxu0 %v1370_v6 }
 0x311   :  { %v964_v47 = vadd.f32 %v1397_v19, %v952_v39  ;;  %v1375_v39 = vld [vmem:[%s2116_s7 + $0x80] sm:$0xff] }
 0x312   :  { %1107 = vmatpush.msra.mxu0 %v1369_v7 }
 0x313   :  { %v972_v51 = vmax.f32 %v964_v47, 0.0 }
 0x316   :  { %v933_v1 = vpop.f32.mrf.mxu2  ;;  %v789_v9 = vpop.f32.mrf.mxu0 }
 0x317   :  { %v854_v60 = vpop.f32.mrf.mxu1  ;;  %v953_v36 = vadd.f32 %v933_v1, %v852_v24  ;;  %v1381_v24 = vld [vmem:[%s2116_s7 + $0xb0] sm:$0xff] }
 0x318   :  { %v855_v20 = vadd.f32 %v854_v60, %v789_v9  ;;  %v1368_v9 = vld [vmem:[%s2116_s7 + $0x58] sm:$0xff]  ;;  %v1367_v60 = vld [vmem:[%s2116_s7 + $0x50] sm:$0xff] }
 0x319   :  { %v965_v44 = vadd.f32 %v1397_v19, %v953_v36  ;;  %1108 = vmatpush.msra.mxu0 %v1368_v9  ;;  %v1376_v36 = vld [vmem:[%s2116_s7 + $0x88] sm:$0xff] }
 0x31b   :  { %v973_v48 = vmax.f32 %v965_v44, 0.0  ;;  %1109 = vmatpush.msra.mxu0 %v1367_v60 }
 0x31e   :  { %v936_v10 = vpop.f32.mrf.mxu2  ;;  %v792_v55 = vpop.f32.mrf.mxu0 }
 0x31f   :  { %v857_v11 = vpop.f32.mrf.mxu1  ;;  %v954_v31 = vadd.f32 %v936_v10, %v855_v20  ;;  %v1366_v10 = vld [vmem:[%s2116_s7 + $0x48] sm:$0xff] }
 0x320   :  { %v858_v16 = vadd.f32 %v857_v11, %v792_v55  ;;  %1110 = vmatpush.msra.mxu0 %v1366_v10  ;;  %v1385_v20 = vld [vmem:[%s2116_s7 + $0xc8] sm:$0xff] }
 0x321   :  { %v966_v42 = vadd.f32 %v1397_v19, %v954_v31  ;;  %v1380_v31 = vld [vmem:[%s2116_s7 + $0xa8] sm:$0xff] }
 0x323   :  { %v974_v46 = vmax.f32 %v966_v42, 0.0 }
 0x326   :  { %v939_v28 = vpop.f32.mrf.mxu2  ;;  %v795_v29 = vpop.f32.mrf.mxu0 }
 0x327   :  { %v860_v50 = vpop.f32.mrf.mxu1  ;;  %v955_v21 = vadd.f32 %v939_v28, %v858_v16  ;;  %v1387_v16 = vld [vmem:[%s2116_s7 + $0xd8] sm:$0xff] }
 0x328   :  { %v861_v35 = vadd.f32 %v860_v50, %v795_v29 }
 0x329   :  { %v967_v38 = vadd.f32 %v1397_v19, %v955_v21  ;;  %v1076_v21 = vld [vmem:[%s2116_s7] sm:$0xff] }
 0x32b   :  { %v975_v43 = vmax.f32 %v967_v38, 0.0 }
 0x32e   :  { %v942_v12 = vpop.f32.mrf.mxu2  ;;  %v798_v25 = vpop.f32.mrf.mxu0 }
 0x32f   :  { %v863_v26 = vpop.f32.mrf.mxu1  ;;  %v956_v17 = vadd.f32 %v942_v12, %v861_v35  ;;  %v1389_v35 = vld [vmem:[%s2116_s7 + $0xe8] sm:$0xff] }
 0x330   :  { %v864_v27 = vadd.f32 %v863_v26, %v798_v25  ;;  %v1365_v25 = vld [vmem:[%s2116_s7 + $0x40] sm:$0xff]  ;;  %v1083_v26 = vld [vmem:[%s2116_s7 + $0x38] sm:$0xff] }
 0x331   :  { %v968_v33 = vadd.f32 %v1397_v19, %v956_v17  ;;  %1111 = vmatpush.msra.mxu0 %v1365_v25  ;;  %1127 = vmatpush.msra.mxu1 %v1083_v26  ;;  %v1078_v17 = vld [vmem:[%s2116_s7 + $0x10] sm:$0xff] }
 0x333   :  { %v976_v41 = vmax.f32 %v968_v33, 0.0  ;;  %v1378_v33 = vld [vmem:[%s2116_s7 + $0x98] sm:$0xff] }
 0x336   :  { %v945_v45 = vpop.f32.mrf.mxu2  ;;  %v801_v30 = vpop.f32.mrf.mxu0 }
 0x337   :  { %v866_v40 = vpop.f32.mrf.mxu1  ;;  %v957_v13 = vadd.f32 %v945_v45, %v864_v27  ;;  %v1391_v45 = vld [vmem:[%s2116_s7 + $0xf8] sm:$0xff]  ;;  %v1081_v27 = vld [vmem:[%s2116_s7 + $0x28] sm:$0xff] }
 0x338   :  { %v867_v14 = vadd.f32 %v866_v40, %v801_v30  ;;  %v1082_v30 = vld [vmem:[%s2116_s7 + $0x30] sm:$0xff]  ;;  %1192 = vmatpush.msrb.mxu0 %v1391_v45 }
 0x339   :  { %v969_v23 = vadd.f32 %v1397_v19, %v957_v13  ;;  %v1390_v40 = vld [vmem:[%s2116_s7 + $0xf0] sm:$0xff]  ;;  %1128 = vmatpush.msra.mxu1 %v1082_v30  ;;  %v1080_v13 = vld [vmem:[%s2116_s7 + $0x20] sm:$0xff] }
 0x33a   :  { %1193 = vmatpush.msrb.mxu0 %v1390_v40 }
 0x33b   :  { %v977_v37 = vmax.f32 %v969_v23, 0.0  ;;  %1129 = vmatpush.msra.mxu1 %v1081_v27  ;;  %v1382_v23 = vld [vmem:[%s2116_s7 + $0xb8] sm:$0xff] }
 0x33c   :  { %1194 = vmatpush.msrb.mxu0 %v1389_v35  ;;  %1159 = vmatpush.msra.mxu2 %v1382_v23 }
 0x33d   :  { %1130 = vmatpush.msra.mxu1 %v1080_v13 }
 0x33e   :  { %v948_v15 = vpop.f32.mrf.mxu2  ;;  %1160 = vmatpush.msra.mxu2 %v1381_v24 }
 0x33f   :  { %v958_v18 = vadd.f32 %v948_v15, %v867_v14  ;;  %v1388_v14 = vld [vmem:[%s2116_s7 + $0xe0] sm:$0xff]  ;;  %v1079_v15 = vld [vmem:[%s2116_s7 + $0x18] sm:$0xff] }
 0x340   :  { %1195 = vmatpush.msrb.mxu0 %v1388_v14  ;;  %1131 = vmatpush.msra.mxu1 %v1079_v15 }
 0x341   :  { %v970_v22 = vadd.f32 %v1397_v19, %v958_v18  ;;  %v1386_v18 = vld [vmem:[%s2116_s7 + $0xd0] sm:$0xff]  ;;  %v1077_v19 = vld [vmem:[%s2116_s7 + $0x8] sm:$0xff]  ;;  %1161 = vmatpush.msra.mxu2 %v1380_v31 }
 0x342   :  { %1196 = vmatpush.msrb.mxu0 %v1387_v16  ;;  %1132 = vmatpush.msra.mxu1 %v1078_v17 }
 0x343   :  { %v978_v32 = vmax.f32 %v970_v22, 0.0  ;;  %v1384_v22 = vld [vmem:[%s2116_s7 + $0xc0] sm:$0xff] }
 0x344   :  { %1197 = vmatpush.msrb.mxu0 %v1386_v18  ;;  %1133 = vmatpush.msra.mxu1 %v1077_v19 }
 0x345   :  { %1019 = vmatpush.msrb.mxu3 %v978_v32  ;;  %v1379_v32 = vld [vmem:[%s2116_s7 + $0xa0] sm:$0xff] }
 0x346   :  { %1198 = vmatpush.msrb.mxu0 %v1385_v20  ;;  %1134 = vmatpush.msra.mxu1 %v1076_v21 }
 0x347   :  { %1020 = vmatpush.msrb.mxu3 %v977_v37  ;;  %1162 = vmatpush.msra.mxu2 %v1379_v32 }
 0x348   :  { %1199 = vmatpush.msrb.mxu0 %v1384_v22 }
 0x349   :  { %1021 = vmatpush.msrb.mxu3 %v976_v41  ;;  %1163 = vmatpush.msra.mxu2 %v1378_v33 }
 0x34b   :  { %1022 = vmatpush.msrb.mxu3 %v975_v43  ;;  %1164 = vmatpush.msra.mxu2 %v1377_v34 }
 0x34d   :  { %1023 = vmatpush.msrb.mxu3 %v974_v46  ;;  %1165 = vmatpush.msra.mxu2 %v1376_v36 }
 0x34f   :  { %1024 = vmatpush.msrb.mxu3 %v973_v48  ;;  %1166 = vmatpush.msra.mxu2 %v1375_v39  ;;  %v1214_v48 = vld [vmem:[%s2119_s9 + $0x18] sm:$0xff] }
 0x350   :  { %1235 = vmatpush.msrb.mxu1 %v1214_v48 }
 0x351   :  { %1025 = vmatpush.msrb.mxu3 %v972_v51  ;;  %v1212_v51 = vld [vmem:[%s2119_s9 + $0x8] sm:$0xff] }
 0x352   :  { %1236 = vmatpush.msrb.mxu1 %v1213_v49 }
 0x353   :  { %1026 = vmatpush.msrb.mxu3 %v971_v52  ;;  %v1211_v52 = vld [vmem:[%s2119_s9] sm:$0xff] }
 0x354   :  { %1357 = vmatmul.msk.f32.vlgmr.msrb.gmra.mxu3 %vm71_vm1, %v979_v53  ;;  %1237 = vmatpush.msrb.mxu1 %v1212_v51 }
 0x356   :  { %1238 = vmatpush.msrb.mxu1 %v1211_v52 }
 0x35c   :  { %1358 = vmatmul.msk.f32.gmra.mxu3 %vm71_vm1, %v980_v54 }
 0x364   :  { %1359 = vmatmul.msk.f32.gmra.mxu3 %vm71_vm1, %v981_v56 }
 0x36c   :  { %1360 = vmatmul.msk.f32.gmra.mxu3 %vm71_vm1, %v982_v57 }
 0x374   :  { %1361 = vmatmul.msk.f32.gmra.mxu3 %vm71_vm1, %v983_v58 }
 0x37c   :  { %1362 = vmatmul.msk.f32.gmra.mxu3 %vm71_vm1, %v984_v59  ;;  %v1398_v59 = vld [vmem:[%s2117_s8] ss:$0 sm:$0xff] }
 0x384   :  { %1363 = vmatmul.msk.f32.gmra.mxu3 %vm71_vm1, %v985_v61 }
 0x38c   :  { %1364 = vmatmul.msk.f32.gmra.mxu3 %vm71_vm1, %v986_v62 }
 0x3d7   :  { %v1028_v63 = vpop.f32.mrf.mxu3 }
 0x3df   :  { %v1031_v0 = vpop.f32.mrf.mxu3 }
 0x3e7   :  { %v1034_v2 = vpop.f32.mrf.mxu3 }
 0x3ef   :  { %v1037_v3 = vpop.f32.mrf.mxu3 }
 0x3f7   :  { %v1040_v8 = vpop.f32.mrf.mxu3 }
 0x3f8   :  { %v1988_v1 = vmax.f32 %v1028_v63, %v1040_v8 }
 0x3fa   :  { %1060 = vrot.lane.b32.xlu1 %v1988_v1, %s1405_s29 }
 0x3ff   :  { %v1043_v55 = vpop.f32.mrf.mxu3 }
 0x400   :  { %v1053_v11 = vmax.f32 %v1031_v0, %v1043_v55 }
 0x402   :  { %1062 = vrot.lane.b32.xlu2 %v1053_v11, %s1405_s29 }
 0x407   :  { %v1046_v28 = vpop.f32.mrf.mxu3 }
 0x408   :  { %v2002_v29 = vmax.f32 %v1034_v2, %v1046_v28  ;;  %v1399_v2 = vld [vmem:[%s2118_s10] ss:$0 sm:$0xff] }
 0x40a   :  { %1064 = vrot.lane.b32.xlu0 %v2002_v29, %s1405_s29 }
 0x40f   :  { %v1049_v50 = vpop.f32.mrf.mxu3 }
 0x410   :  { %v1055_v12 = vmax.f32 %v1037_v3, %v1049_v50 }
 0x412   :  { %1066 = vrot.lane.b32.xlu2 %v1055_v12, %s1405_s29 }
 0x45c   :  { %v1063_v37 = vpop.permute.xlu2 %1062 }
 0x45d   :  { %v1073_v38 = vmax.f32 %v1053_v11, %v1063_v37 }
 0x45f   :  { %1373 = vmatmul.msk.f32.vlgmr.msra.gmra.mxu0 %vm71_vm1, %v1073_v38 }
 0x46c   :  { %v1061_v41 = vpop.permute.xlu1 %1060  ;;  %v1067_v42 = vpop.permute.xlu2 %1066 }
 0x46d   :  { %v1072_v43 = vmax.f32 %v1988_v1, %v1061_v41  ;;  %v1075_v44 = vmax.f32 %v1055_v12, %v1067_v42 }
 0x46f   :  { %1374 = vmatmul.msk.f32.vlgmr.msra.gmra.mxu1 %vm71_vm1, %v1072_v43  ;;  %1392 = vmatmul.msk.f32.vlgmr.msrb.gmra.mxu0 %vm71_vm1, %v1075_v44 }
 0x47c   :  { %v1065_v46 = vpop.permute.xlu0 %1064 }
 0x47d   :  { %v1074_v47 = vmax.f32 %v2002_v29, %v1065_v46 }
 0x47f   :  { %1383 = vmatmul.msk.f32.vlgmr.msra.gmra.mxu2 %vm71_vm1, %v1074_v47 }
 0x4dc   :  { %v1113_v53 = vpop.f32.mrf.mxu0 }
 0x4ec   :  { %v1136_v54 = vpop.f32.mrf.mxu1  ;;  %v1201_v61 = vpop.f32.mrf.mxu0 }
 0x4ed   :  { %v1137_v56 = vadd.f32 %v1136_v54, %v1113_v53 }
 0x502   :  { %v1168_v57 = vpop.f32.mrf.mxu2 }
 0x503   :  { %v1171_v58 = vadd.f32 %v1168_v57, %v1137_v56 }
 0x505   :  { %v1204_v62 = vadd.f32 %v1201_v61, %v1171_v58 }
 0x507   :  { %v1209_v63 = vadd.f32 %v1398_v59, %v1204_v62 }
 0x509   :  { %v1210_v0 = vmax.f32 %v1209_v63, 0.0 }
 0x50b   :  { %1393 = vmatmul.msk.f32.vlgmr.msrb.gmra.mxu1 %vm1219_vm2, %v1210_v0 }
 0x588   :  { %v1240_v3 = vpop.f32.mrf.mxu1 }
 0x589   :  { %v1241_v4 = vadd.f32 %v1399_v2, %v1240_v3 }
 0x58b   :  { %v1243_v5 = vsub.f32 0.0, %v1241_v4 }
 0x58d   :  { %v1244_v6 = vmul.f32 1.442695, %v1243_v5 }
 0x58f   :  { %1400 = vpow2.f32 %v1244_v6 }
 0x595   :  { %v1401_v7 = vpop.eup %1400 }
 0x596   :  { %v1246_v8 = vadd.f32 1.0, %v1401_v7 }
 0x598   :  { %1402 = vrcp.f32 %v1246_v8 }
 0x59e   :  { %v1403_v1 = vpop.eup %1402 }
 0x59f   :  { %1248 = vst [vmem:[%s2120_s11] sm:$0xff] %v1403_v1 }

</bundles_post_ra>
